<compile_context>
chip_gen: v5e
topology: v5e:2x2
jax: 0.10.0
libtpu: 0.0.40
codegen_flags: <defaults>
</compile_context>

<pallas_src>
import functools

import jax
import jax.numpy as jnp
from jax.experimental import pallas as pl
from jax.experimental.pallas import tpu as pltpu


def additive_attention_kernel(x_ref, m_ref, w1_ref, b1_ref, w2_ref, b2_ref, o_ref,
                              *, approx_reciprocal=True):
    Bt, S, D = x_ref.shape
    H = w1_ref.shape[1]

    x = x_ref[...]                                  # (Bt, S, D) native dtype (f32 or bf16)
    m = m_ref[...].astype(jnp.float32)              # (Bt, S)

    # att_fc1 + tanh: batch folded into the MXU M dimension; matmul runs in the streamed
    # dtype (bf16 or f32) and accumulates in f32.
    # TODO(synk): x.reshape(Bt*S, D) is a layout no-op only when S % 8 == 0; for other
    # history lengths pad S to a multiple of 8 upstream (masked steps are inert) to avoid
    # an in-kernel relayout copy.
    e = jnp.tanh(
        jnp.dot(x.reshape(Bt * S, D), w1_ref[...],
                preferred_element_type=jnp.float32)
        + b1_ref[...]
    )                                               # (Bt*S, H) f32

    # att_fc2 as a VPU multiply + lane reduce (avoids an N=1 MXU pass).
    scores = jnp.sum(e.reshape(Bt, S, H) * w2_ref[0], axis=-1) + b2_ref[0, 0]    # (Bt, S)

    # Masked exp-normalization, matching torch AdditiveAttention (exp, *mask, /(sum+1e-8)).
    # TODO(synk): no max-subtraction before exp (faithful to the PyTorch module; safe here
    # because tanh bounds |scores| by ||w2||_1 + |b2|).
    alpha = jnp.exp(scores) * m                                                   # (Bt, S)
    inv = pl.reciprocal(jnp.sum(alpha, axis=-1, keepdims=True) + 1e-8,
                        approx=approx_reciprocal)                                 # (Bt, 1)
    alpha = alpha * inv

    # Weighted sum over the history axis: multiply + sublane reduce, no transpose matmul.
    # (The block-sized temporary here is accounted for in the block_b VMEM budget.)
    xf = x.astype(jnp.float32)    # no-op for f32 streams; single cast for bf16 streams
    o_ref[...] = jnp.sum(alpha[:, :, None] * xf, axis=1).astype(o_ref.dtype)      # (Bt, D)


def _round_up(x, m):
    return (x + m - 1) // m * m


def _vmem_capacity_bytes():
    try:
        info = pltpu.get_tpu_info()
        cap = int(getattr(info, "vmem_capacity_bytes", 0) or 0)
        if cap > 0:
            return cap
    except Exception:
        pass
    return 64 * 1024 * 1024   # conservative default (v7x per-TC physical VMEM)


def _choose_block_b(B, S, D, H, x_bytes, mask_bytes, vmem_budget_bytes):
    """Largest multiple-of-8 batch block whose live VMEM footprint fits the budget,
    capped so the batch grid keeps >= 2 steps (lets the 'parallel' axis shard across
    both v7x TensorCores)."""
    Dp = _round_up(D, 128)     # lane padding of the news_dim axis (4x bloat at D=32)
    Hp = _round_up(H, 128)
    Sp = _round_up(S, 128)
    per_row = (
        2 * S * Dp * x_bytes      # double-buffered log_vec input block
        + 2 * Sp * mask_bytes     # double-buffered mask block
        + S * Dp * 4              # f32 view of x for the weighted sum (bf16 streams)
        + S * Hp * 4              # e = tanh(fc1) activation
        + S * Dp * 4              # alpha[:, :, None] * x temporary
        + 2 * Dp * 4              # double-buffered output block
        + 4 * Sp * 4              # scores / alpha rows (small)
    )
    blk = max(8, (int(vmem_budget_bytes) // max(per_row, 1)) // 8 * 8)
    full = _round_up(B, 8)
    half = max(8, _round_up(pl.cdiv(B, 2), 8))   # keep >= 2 grid steps when B allows it
    return int(min(blk, full, half))


def user_encoder_forward(log_vec, log_mask, w1, b1, w2, b2,
                         block_b=None, approx_reciprocal=True):
    """log_vec: (B, S, D) f32/bf16; log_mask: (B, S); returns (B, D) f32.

    No wrapper-side pad/astype HBM passes: ragged last batch blocks read undefined OOB
    rows whose outputs are dropped by the masked store (never rely on rows >= B).
    """
    B, S, D = log_vec.shape
    H = w1.shape[1]

    x_dtype = log_vec.dtype
    # Cast only the tiny weights: W1 matches the streamed dtype (homogeneous MXU matmul),
    # biases / w2 row stay f32 for the f32 epilogue.
    w1 = jnp.asarray(w1, jnp.bfloat16 if x_dtype == jnp.bfloat16 else jnp.float32)
    b1 = jnp.asarray(b1, jnp.float32).reshape(1, H)
    w2_row = jnp.asarray(w2, jnp.float32).reshape(1, H)
    b2 = jnp.asarray(b2, jnp.float32).reshape(1, 1)

    vmem_cap = _vmem_capacity_bytes()
    if block_b is None:
        block_b = _choose_block_b(
            B, S, D, H,
            x_bytes=jnp.dtype(x_dtype).itemsize,
            mask_bytes=jnp.dtype(log_mask.dtype).itemsize,
            vmem_budget_bytes=int(vmem_cap * 0.4),
        )
    else:
        block_b = max(8, int(block_b) // 8 * 8)

    grid = (pl.cdiv(B, block_b),)
    vmem_limit = int(min(vmem_cap * 0.75, 100 * 1024 * 1024))

    kernel = functools.partial(additive_attention_kernel,
                               approx_reciprocal=approx_reciprocal)

    def build(weight_kwargs):
        return pl.pallas_call(
            kernel,
            out_shape=jax.ShapeDtypeStruct((B, D), jnp.float32),
            grid_spec=pltpu.PrefetchScalarGridSpec(
                num_scalar_prefetch=0,
                grid=grid,
                in_specs=[
                    pl.BlockSpec((block_b, S, D), lambda i: (i, 0, 0)),   # log_vec block
                    pl.BlockSpec((block_b, S), lambda i: (i, 0)),          # mask block
                    pl.BlockSpec((D, H), lambda i: (0, 0), **weight_kwargs),   # W1 resident
                    pl.BlockSpec((1, H), lambda i: (0, 0), **weight_kwargs),   # b1
                    pl.BlockSpec((1, H), lambda i: (0, 0), **weight_kwargs),   # w2 row
                    pl.BlockSpec(memory_space=pltpu.MemorySpace.SMEM),          # b2 scalar
                ],
                # TODO(synk): for production D < 128 a lane-dense packed output view
                # ((B*D/128, 128)) would turn the masked vst into full-width stores.
                out_specs=pl.BlockSpec((block_b, D), lambda i: (i, 0)),
            ),
            compiler_params=pltpu.CompilerParams(
                dimension_semantics=("parallel",),
                vmem_limit_bytes=vmem_limit,
            ),
        )

    args = (log_vec, log_mask, w1, b1, w2_row, b2)
    try:
        # Resident weights single-buffered: constant index_map -> fetched once; frees the
        # second buffer's VMEM so block_b can be one notch bigger.
        return build(dict(pipeline_mode=pl.Buffered(1)))(*args)
    except Exception:
        # Fallback for jax versions without BlockSpec.pipeline_mode support.
        return build({})(*args)


def reference_forward(log_vec, log_mask, w1, b1, w2, b2):
    """Pure-JAX reference matching the PyTorch AdditiveAttention semantics."""
    e = jnp.tanh(jnp.einsum("bsd,dh->bsh", log_vec, w1) + b1)              # (B, S, H)
    scores = jnp.einsum("bsh,ho->bso", e, w2) + b2                          # (B, S, 1)
    alpha = jnp.exp(scores) * log_mask[..., None]
    alpha = alpha / (jnp.sum(alpha, axis=1, keepdims=True) + 1e-8)
    return jnp.einsum("bsd,bso->bd", log_vec, alpha)                        # (B, D)


if __name__ == "__main__":
    # Shapes consistent with the module: news_dim D=32, user_query_vector_dim H=16,
    # history length S=8.
    S, D, H = 8, 32, 16

    key = jax.random.PRNGKey(0)
    k_vec, k_w1, k_b1, k_w2, k_b2 = jax.random.split(key, 5)

    # AdditiveAttention parameters: Linear(D, H) then Linear(H, 1).
    w1 = jax.random.normal(k_w1, (D, H), dtype=jnp.float32) * 0.1
    b1 = jax.random.normal(k_b1, (1, H), dtype=jnp.float32) * 0.01
    w2 = jax.random.normal(k_w2, (H, 1), dtype=jnp.float32) * 0.1
    b2 = jax.random.normal(k_b2, (1, 1), dtype=jnp.float32) * 0.01

    # --- Test 1: f32 input, exact reciprocal, ragged last batch block (B=13, block_b=8),
    #     one all-zero mask row -> strict parity with the torch semantics. ---
    B = 13
    log_vec = jax.random.normal(k_vec, (B, S, D), dtype=jnp.float32)
    lengths = jnp.arange(B) % S                      # row 0 has length 0 (fully masked)
    log_mask = (jnp.arange(S)[None, :] < lengths[:, None]).astype(jnp.float32)

    out = user_encoder_forward(log_vec, log_mask, w1, b1, w2, b2,
                               approx_reciprocal=False)
    out = jax.block_until_ready(out)
    ref = reference_forward(log_vec, log_mask, w1, b1, w2, b2)
    assert out.shape == (B, D), out.shape
    assert jnp.allclose(out, ref, atol=1e-5, rtol=1e-5), "f32 mismatch vs reference"

    # --- Test 2: bf16 input stream + EUP approximate reciprocal (default fast path). ---
    B2 = 16
    log_vec_bf = jax.random.normal(k_vec, (B2, S, D), dtype=jnp.float32).astype(jnp.bfloat16)
    lengths2 = (jnp.arange(B2) % S) + 1
    mask2 = (jnp.arange(S)[None, :] < lengths2[:, None]).astype(jnp.float32)

    out_bf = user_encoder_forward(log_vec_bf, mask2, w1, b1, w2, b2)
    out_bf = jax.block_until_ready(out_bf)
    ref_bf = reference_forward(log_vec_bf.astype(jnp.float32), mask2, w1, b1, w2, b2)
    assert out_bf.shape == (B2, D)
    # Loose tolerance: bf16-rounded W1 + EUP approximate reciprocal.
    assert jnp.allclose(out_bf, ref_bf, atol=3e-2, rtol=3e-2), "bf16 mismatch vs reference"

    print("KERNEL_OK")
</pallas_src>

<mosaic_0001>
module attributes {stable_mosaic.version = 11 : i64} {
  func.func @additive_attention_kernel(%arg0: i32, %arg1: memref<8x8x32xf32, #tpu.memory_space<vmem>>, %arg2: memref<8x8xf32, #tpu.memory_space<vmem>>, %arg3: memref<32x16xf32, #tpu.memory_space<vmem>>, %arg4: memref<1x16xf32, #tpu.memory_space<vmem>>, %arg5: memref<1x16xf32, #tpu.memory_space<vmem>>, %arg6: memref<1x1xf32, #tpu.memory_space<smem>>, %arg7: memref<8x32xf32, #tpu.memory_space<vmem>>) attributes {dimension_semantics = [#tpu.dimension_semantics<parallel>], iteration_bounds = array<i64: 2>, scalar_prefetch = 0 : i64, scratch_operands = 0 : i64, tpu.core_type = #tpu.core_type<tc>, window_params = [{transform_indices = @transform_0, window_bounds = array<i64: 8, 8, 32>}, {transform_indices = @transform_1, window_bounds = array<i64: 8, 8>}, {pipeline_mode = #tpu.pipeline_mode<synchronous>, transform_indices = @transform_2, window_bounds = array<i64: 32, 16>}, {pipeline_mode = #tpu.pipeline_mode<synchronous>, transform_indices = @transform_3, window_bounds = array<i64: 1, 16>}, {pipeline_mode = #tpu.pipeline_mode<synchronous>, transform_indices = @transform_4, window_bounds = array<i64: 1, 16>}, {transform_indices = @transform_5, window_bounds = array<i64: 1, 1>}, {transform_indices = @transform_6, window_bounds = array<i64: 8, 32>}]} {
    %c0 = arith.constant 0 : index
    %c0_0 = arith.constant 0 : index
    %c0_1 = arith.constant 0 : index
    %0 = vector.load %arg1[%c0, %c0_0, %c0_1] : memref<8x8x32xf32, #tpu.memory_space<vmem>>, vector<8x8x32xf32>
    %c0_2 = arith.constant 0 : index
    %c0_3 = arith.constant 0 : index
    %1 = vector.load %arg2[%c0_2, %c0_3] : memref<8x8xf32, #tpu.memory_space<vmem>>, vector<8x8xf32>
    %2 = vector.shape_cast %0 : vector<8x8x32xf32> to vector<64x32xf32>
    %c0_4 = arith.constant 0 : index
    %c0_5 = arith.constant 0 : index
    %3 = vector.load %arg3[%c0_4, %c0_5] : memref<32x16xf32, #tpu.memory_space<vmem>>, vector<32x16xf32>
    %cst = arith.constant dense<0.000000e+00> : vector<64x16xf32>
    %4 = tpu.matmul %2, %3, %cst {dimension_numbers = #tpu.dot_dimension_numbers<[1], [0], [0], [1], [0, 0, 1, 1], [], []>} : vector<64x32xf32>, vector<32x16xf32>, vector<64x16xf32> -> vector<64x16xf32>
    %c0_6 = arith.constant 0 : index
    %c0_7 = arith.constant 0 : index
    %5 = vector.load %arg4[%c0_6, %c0_7] : memref<1x16xf32, #tpu.memory_space<vmem>>, vector<1x16xf32>
    %6 = vector.broadcast %5 : vector<1x16xf32> to vector<64x16xf32>
    %7 = arith.addf %4, %6 : vector<64x16xf32>
    %8 = math.tanh %7 : vector<64x16xf32>
    %9 = vector.shape_cast %8 : vector<64x16xf32> to vector<8x8x16xf32>
    %c0_8 = arith.constant 0 : index
    %c0_9 = arith.constant 0 : index
    %10 = vector.load %arg5[%c0_8, %c0_9] : memref<1x16xf32, #tpu.memory_space<vmem>>, vector<1x16xf32>
    %11 = vector.shape_cast %10 : vector<1x16xf32> to vector<16xf32>
    %12 = vector.shape_cast %11 : vector<16xf32> to vector<1x1x16xf32>
    %13 = vector.broadcast %12 : vector<1x1x16xf32> to vector<8x8x16xf32>
    %14 = arith.mulf %9, %13 : vector<8x8x16xf32>
    %cst_10 = arith.constant dense<0.000000e+00> : vector<8x8xf32>
    %15 = vector.multi_reduction <add>, %14, %cst_10 [2] : vector<8x8x16xf32> to vector<8x8xf32>
    %c0_11 = arith.constant 0 : index
    %c0_12 = arith.constant 0 : index
    %16 = memref.load %arg6[%c0_11, %c0_12] : memref<1x1xf32, #tpu.memory_space<smem>>
    %17 = vector.broadcast %16 : f32 to vector<8x8xf32>
    %18 = arith.addf %15, %17 : vector<8x8xf32>
    %19 = math.exp %18 : vector<8x8xf32>
    %20 = arith.mulf %19, %1 : vector<8x8xf32>
    %cst_13 = arith.constant dense<0.000000e+00> : vector<8xf32>
    %21 = vector.multi_reduction <add>, %20, %cst_13 [1] : vector<8x8xf32> to vector<8xf32>
    %22 = vector.shape_cast %21 : vector<8xf32> to vector<8x1xf32>
    %cst_14 = arith.constant 9.99999993E-9 : f32
    %23 = vector.broadcast %cst_14 : f32 to vector<8x1xf32>
    %24 = arith.addf %22, %23 : vector<8x1xf32>
    %25 = tpu.reciprocal %24 : vector<8x1xf32> -> vector<8x1xf32>
    %26 = vector.broadcast %25 : vector<8x1xf32> to vector<8x8xf32>
    %27 = arith.mulf %20, %26 : vector<8x8xf32>
    %28 = vector.shape_cast %27 : vector<8x8xf32> to vector<8x8x1xf32>
    %29 = vector.broadcast %28 : vector<8x8x1xf32> to vector<8x8x32xf32>
    %30 = arith.mulf %29, %0 : vector<8x8x32xf32>
    %cst_15 = arith.constant dense<0.000000e+00> : vector<8x32xf32>
    %31 = vector.multi_reduction <add>, %30, %cst_15 [1] : vector<8x8x32xf32> to vector<8x32xf32>
    %c0_16 = arith.constant 0 : index
    %c0_17 = arith.constant 0 : index
    %32 = vector.load %arg7[%c0_16, %c0_17] : memref<8x32xf32, #tpu.memory_space<vmem>>, vector<8x32xf32>
    tpu.vector_store %arg7[%c0_16, %c0_17], %31 {strides = array<i32>} : memref<8x32xf32, #tpu.memory_space<vmem>>, vector<8x32xf32>,
    return
  }
  func.func @transform_0(%arg0: i32) -> (i32, i32, i32) {
    %c0_i32 = arith.constant 0 : i32
    %c0_i32_0 = arith.constant 0 : i32
    %c0_i32_1 = arith.constant 0 : i32
    return %arg0, %c0_i32, %c0_i32_0 : i32, i32, i32
  }
  func.func @transform_1(%arg0: i32) -> (i32, i32) {
    %c0_i32 = arith.constant 0 : i32
    %c0_i32_0 = arith.constant 0 : i32
    return %arg0, %c0_i32 : i32, i32
  }
  func.func @transform_2(%arg0: i32) -> (i32, i32) {
    %c0_i32 = arith.constant 0 : i32
    %c0_i32_0 = arith.constant 0 : i32
    %c0_i32_1 = arith.constant 0 : i32
    return %c0_i32, %c0_i32_0 : i32, i32
  }
  func.func @transform_3(%arg0: i32) -> (i32, i32) {
    %c0_i32 = arith.constant 0 : i32
    %c0_i32_0 = arith.constant 0 : i32
    %c0_i32_1 = arith.constant 0 : i32
    return %c0_i32, %c0_i32_0 : i32, i32
  }
  func.func @transform_4(%arg0: i32) -> (i32, i32) {
    %c0_i32 = arith.constant 0 : i32
    %c0_i32_0 = arith.constant 0 : i32
    %c0_i32_1 = arith.constant 0 : i32
    return %c0_i32, %c0_i32_0 : i32, i32
  }
  func.func @transform_5(%arg0: i32) -> (i32, i32) {
    %c0_i32 = arith.constant 0 : i32
    %c0_i32_0 = arith.constant 0 : i32
    %c0_i32_1 = arith.constant 0 : i32
    return %c0_i32, %c0_i32_0 : i32, i32
  }
  func.func @transform_6(%arg0: i32) -> (i32, i32) {
    %c0_i32 = arith.constant 0 : i32
    %c0_i32_0 = arith.constant 0 : i32
    return %arg0, %c0_i32 : i32, i32
  }
}

module attributes {stable_mosaic.version = 11 : i64} {
  func.func @additive_attention_kernel(%arg0: i32, %arg1: memref<8x8x32xf32, #tpu.memory_space<vmem>>, %arg2: memref<8x8xf32, #tpu.memory_space<vmem>>, %arg3: memref<32x16xf32, #tpu.memory_space<vmem>>, %arg4: memref<1x16xf32, #tpu.memory_space<vmem>>, %arg5: memref<1x16xf32, #tpu.memory_space<vmem>>, %arg6: memref<1x1xf32, #tpu.memory_space<smem>>, %arg7: memref<8x32xf32, #tpu.memory_space<vmem>>) attributes {dimension_semantics = [#tpu.dimension_semantics<parallel>], iteration_bounds = array<i64: 2>, scalar_prefetch = 0 : i64, scratch_operands = 0 : i64, tpu.core_type = #tpu.core_type<tc>, window_params = [{transform_indices = @transform_0, window_bounds = array<i64: 8, 8, 32>}, {transform_indices = @transform_1, window_bounds = array<i64: 8, 8>}, {pipeline_mode = #tpu.pipeline_mode<synchronous>, transform_indices = @transform_2, window_bounds = array<i64: 32, 16>}, {pipeline_mode = #tpu.pipeline_mode<synchronous>, transform_indices = @transform_3, window_bounds = array<i64: 1, 16>}, {pipeline_mode = #tpu.pipeline_mode<synchronous>, transform_indices = @transform_4, window_bounds = array<i64: 1, 16>}, {transform_indices = @transform_5, window_bounds = array<i64: 1, 1>}, {transform_indices = @transform_6, window_bounds = array<i64: 8, 32>}]} {
    %c0 = arith.constant 0 : index
    %c0_0 = arith.constant 0 : index
    %c0_1 = arith.constant 0 : index
    %0 = vector.load %arg1[%c0, %c0_0, %c0_1] : memref<8x8x32xf32, #tpu.memory_space<vmem>>, vector<8x8x32xf32>
    %c0_2 = arith.constant 0 : index
    %c0_3 = arith.constant 0 : index
    %1 = vector.load %arg2[%c0_2, %c0_3] : memref<8x8xf32, #tpu.memory_space<vmem>>, vector<8x8xf32>
    %2 = vector.shape_cast %0 : vector<8x8x32xf32> to vector<64x32xf32>
    %c0_4 = arith.constant 0 : index
    %c0_5 = arith.constant 0 : index
    %3 = vector.load %arg3[%c0_4, %c0_5] : memref<32x16xf32, #tpu.memory_space<vmem>>, vector<32x16xf32>
    %cst = arith.constant dense<0.000000e+00> : vector<64x16xf32>
    %4 = tpu.matmul %2, %3, %cst {dimension_numbers = #tpu.dot_dimension_numbers<[1], [0], [0], [1], [0, 0, 1, 1], [], []>} : vector<64x32xf32>, vector<32x16xf32>, vector<64x16xf32> -> vector<64x16xf32>
    %c0_6 = arith.constant 0 : index
    %c0_7 = arith.constant 0 : index
    %5 = vector.load %arg4[%c0_6, %c0_7] : memref<1x16xf32, #tpu.memory_space<vmem>>, vector<1x16xf32>
    %6 = vector.broadcast %5 : vector<1x16xf32> to vector<64x16xf32>
    %7 = arith.addf %4, %6 : vector<64x16xf32>
    %8 = math.tanh %7 : vector<64x16xf32>
    %9 = vector.shape_cast %8 : vector<64x16xf32> to vector<8x8x16xf32>
    %c0_8 = arith.constant 0 : index
    %c0_9 = arith.constant 0 : index
    %10 = vector.load %arg5[%c0_8, %c0_9] : memref<1x16xf32, #tpu.memory_space<vmem>>, vector<1x16xf32>
    %11 = vector.shape_cast %10 : vector<1x16xf32> to vector<16xf32>
    %12 = vector.shape_cast %11 : vector<16xf32> to vector<1x1x16xf32>
    %13 = vector.broadcast %12 : vector<1x1x16xf32> to vector<8x8x16xf32>
    %14 = arith.mulf %9, %13 : vector<8x8x16xf32>
    %cst_10 = arith.constant dense<0.000000e+00> : vector<8x8xf32>
    %15 = vector.multi_reduction <add>, %14, %cst_10 [2] : vector<8x8x16xf32> to vector<8x8xf32>
    %c0_11 = arith.constant 0 : index
    %c0_12 = arith.constant 0 : index
    %16 = memref.load %arg6[%c0_11, %c0_12] : memref<1x1xf32, #tpu.memory_space<smem>>
    %17 = vector.broadcast %16 : f32 to vector<8x8xf32>
    %18 = arith.addf %15, %17 : vector<8x8xf32>
    %19 = math.exp %18 : vector<8x8xf32>
    %20 = arith.mulf %19, %1 : vector<8x8xf32>
    %cst_13 = arith.constant dense<0.000000e+00> : vector<8xf32>
    %21 = vector.multi_reduction <add>, %20, %cst_13 [1] : vector<8x8xf32> to vector<8xf32>
    %22 = vector.shape_cast %21 : vector<8xf32> to vector<8x1xf32>
    %cst_14 = arith.constant 9.99999993E-9 : f32
    %23 = vector.broadcast %cst_14 : f32 to vector<8x1xf32>
    %24 = arith.addf %22, %23 : vector<8x1xf32>
    %25 = tpu.reciprocal %24 : vector<8x1xf32> -> vector<8x1xf32>
    %26 = vector.broadcast %25 : vector<8x1xf32> to vector<8x8xf32>
    %27 = arith.mulf %20, %26 : vector<8x8xf32>
    %28 = vector.shape_cast %27 : vector<8x8xf32> to vector<8x8x1xf32>
    %29 = vector.broadcast %28 : vector<8x8x1xf32> to vector<8x8x32xf32>
    %30 = arith.mulf %29, %0 : vector<8x8x32xf32>
    %cst_15 = arith.constant dense<0.000000e+00> : vector<8x32xf32>
    %31 = vector.multi_reduction <add>, %30, %cst_15 [1] : vector<8x8x32xf32> to vector<8x32xf32>
    %c0_16 = arith.constant 0 : index
    %c0_17 = arith.constant 0 : index
    %32 = vector.load %arg7[%c0_16, %c0_17] : memref<8x32xf32, #tpu.memory_space<vmem>>, vector<8x32xf32>
    tpu.vector_store %arg7[%c0_16, %c0_17], %31 {strides = array<i32>} : memref<8x32xf32, #tpu.memory_space<vmem>>, vector<8x32xf32>,
    return
  }
  func.func @transform_0(%arg0: i32) -> (i32, i32, i32) {
    %c0_i32 = arith.constant 0 : i32
    %c0_i32_0 = arith.constant 0 : i32
    %c0_i32_1 = arith.constant 0 : i32
    return %arg0, %c0_i32, %c0_i32_0 : i32, i32, i32
  }
  func.func @transform_1(%arg0: i32) -> (i32, i32) {
    %c0_i32 = arith.constant 0 : i32
    %c0_i32_0 = arith.constant 0 : i32
    return %arg0, %c0_i32 : i32, i32
  }
  func.func @transform_2(%arg0: i32) -> (i32, i32) {
    %c0_i32 = arith.constant 0 : i32
    %c0_i32_0 = arith.constant 0 : i32
    %c0_i32_1 = arith.constant 0 : i32
    return %c0_i32, %c0_i32_0 : i32, i32
  }
  func.func @transform_3(%arg0: i32) -> (i32, i32) {
    %c0_i32 = arith.constant 0 : i32
    %c0_i32_0 = arith.constant 0 : i32
    %c0_i32_1 = arith.constant 0 : i32
    return %c0_i32, %c0_i32_0 : i32, i32
  }
  func.func @transform_4(%arg0: i32) -> (i32, i32) {
    %c0_i32 = arith.constant 0 : i32
    %c0_i32_0 = arith.constant 0 : i32
    %c0_i32_1 = arith.constant 0 : i32
    return %c0_i32, %c0_i32_0 : i32, i32
  }
  func.func @transform_5(%arg0: i32) -> (i32, i32) {
    %c0_i32 = arith.constant 0 : i32
    %c0_i32_0 = arith.constant 0 : i32
    %c0_i32_1 = arith.constant 0 : i32
    return %c0_i32, %c0_i32_0 : i32, i32
  }
  func.func @transform_6(%arg0: i32) -> (i32, i32) {
    %c0_i32 = arith.constant 0 : i32
    %c0_i32_0 = arith.constant 0 : i32
    return %arg0, %c0_i32 : i32, i32
  }
}

</mosaic_0001>

<bundles_post_ra>
// kernel: tpu_custom_call.1
= control target key start
LH: loop header
LB: loop body
LE: loop exit
PB: predicated region body
PF: predicated region fallthrough
CT: control target
= control target key end

     0   :  { %s1415_s0 = inlined_call_operand.hbm [shape: f32[13,8,32], index: 0, kind: input, shape index: {}]   ;;  %s1416_s1 = inlined_call_operand.vmem [shape: f32[13,8], index: 1, kind: input, shape index: {}]   ;;  %s1417_s2 = inlined_call_operand.vmem [shape: f32[32,16], index: 2, kind: input, shape index: {}]   ;;  %s1418_s3 = inlined_call_operand.vmem [shape: f32[1,16], index: 3, kind: input, shape index: {}]   ;;  %s1419_s4 = inlined_call_operand.vmem [shape: f32[1,16], index: 4, kind: input, shape index: {}]   ;;  %s1420_s5 = inlined_call_operand.<no memory space> [shape: f32[1,1], index: 5, kind: input, shape index: {}]   ;;  %s1421_s6 = inlined_call_operand.hbm [shape: f32[13,32], index: 6, kind: output, shape index: {}]  }
   0x1   :  { %11 = sst [smem:[#allocation2]] %s1420_s5 }
   0x2   :  { %12 = vsyncpa [#allocation4], 0 }
   0x3   :  { %14 = vsyncpa [#allocation4 + $0x1], 0 }
   0x4   :  { %15 = vsyncpa [#allocation5], 0 }
   0x5   :  { %17 = vsyncpa [#allocation5 + $0x1], 0  ;;  %s1122_s23 = smov 0   ;;  %s1124_s24 = smov 0  }
   0x6   :  { %s1126_s25 = smov 0   ;;  %s1128_s26 = smov 0  }
   0x7 LB: > { %s1143_s5 = sadd.s32 4294967295, %s1078_s26   ;;  %s849_s27 = sadd.s32 4294967294, %s1078_s26   ;;  %s1078_s26 = sphi %s1128_s26, %s1433_s26   ;;  %s1074_s25 = sphi %s1126_s25, %s1432_s25   ;;  %s1070_s24 = sphi %s1124_s24, %s1431_s24   ;;  %s1066_s23 = sphi %s1122_s23, %s1430_s23  }
   0x8   : > { %s1147_s28 = sadd.s32 1, %s1078_s26   ;;  %s30_s29 = sadd.s32 1, %s1074_s25 }
   0x9   : > { %s27_s30 = ssub.s32 %s1078_s26, %s1147_s28  ;;  %p37_p0 = scmp.ne.s32.totalorder %s1074_s25, %s1070_s24 }
   0xa   : > { %p28_p1 = scmp.eq.s32.totalorder %s27_s30, 0  ;;  %p38_p2 = scmp.eq.s32.totalorder %s1078_s26, 0 }
   0xb   : > { %p43_p3 = scmp.ne.s32.totalorder %s1070_s24, %s1066_s23  ;;  %p44_p4 = scmp.eq.s32.totalorder %s1143_s5, 0 }
   0xc   : > { %s1159_s7 = scalar_select %p28_p1, %s1074_s25, %s30_s29  }
   0xd   : > { %p39_p5 = por %p38_p2, %p37_p0  ;;  %p1161_p6 = por %p44_p4, %p43_p3 }
   0xe   : > { %p177_p7 = scmp.eq.s32.totalorder %s1143_s5, 1  ;;  %p183_p8 = scmp.eq.s32.totalorder %s849_s27, 1 }
   0xf   : > { %p1423_p11 = scmp.ge.s32.totalorder %s1078_s26, 2 }
  0x10   : > { %p1166_p9 = por %p177_p7, %p37_p0  ;;  %p1170_p10 = por %p183_p8, %p43_p3 }
  0x11   : > { %211 = sbr.rel (%p1423_p11) target bundleno = 59 (0x3b), region = 32 }
  0x16   : > { %214 = sbr.rel (!%p39_p5) target bundleno = 59 (0x3b), region = 36  ;;  %s215_s11 = sand.u32 (%p39_p5), 1, %s1074_s25  }
  0x17   : > { %s853_s12 = sshll.u32 (%p39_p5), %s1078_s26, 3  ;;  %s852_s13 = sshll.u32 (%p39_p5), %s215_s11, 6 }
  0x18   : > { %s221_s14 = ssub.s32 (%p39_p5), 13, %s853_s12  ;;  %s1182_s18 = scalar_lea.sflag (%p39_p5), [#allocation4], %s215_s11 }
  0x19   : > { %p222_p12 = scmp.lt.s32.totalorder (%p39_p5), %s221_s14, 8  ;;  %s219_s19 = scalar_lea.vmem (%p39_p5), [#allocation3], %s852_s13 }
  0x1b   : > { %s1435_s14 = smov (!%p222_p12, %s221_s14), 8 }
  0x1c   : > { %s854_s15 = sshll.u32 %s1435_s14, 3 }
  0x1d   : > { %s225_s16 = ssub.s32 64, %s854_s15 }
  0x1e   : > { %s226_s17 = sshll.u32 %s225_s16, 4 }
  0x1f   : > { %227 = vsyncadd %s1182_s18, %s226_s17  ;;  %p1185_p13 = scmp.ne.s32.totalorder %s854_s15, 0  ;;  %s875_s21 = sshll.u32 %s1078_s26, 6 }
  0x20   : > { %s230_s29 = scalar_lea.hbm %s1415_s0, %s875_s21  ;;  %s1193_s30 = sshll.u32 %s219_s19, 4  ;;  %s235_s30 = int_to_ptr.vmem [resolvable:$true] %s1193_s30 }
  0x21   : > { %s232_s11 = sshll.u32 %s230_s29, 4  ;;  %s1422_s12 = sshll.u32 %s1435_s14, 7  ;;  %s1196_s11 = int_to_ptr.hbm [resolvable:$true] %s232_s11 }
  0x22   : > { %s973_s13 = sshra.s32 %s1196_s11, 4  ;;  %s975_s15 = sshrl.u32 %s1422_s12, 4  ;;  %s974_s13 = int_to_ptr.hbm [resolvable:$true] %s973_s13 }
  0x23   : > { %s980_s16 = scalar_lea.hbm %s974_s13, %s975_s15  ;;  %s984_s19 = scalar_lea.hbm %s1415_s0, 104 }
  0x24   : > { %p981_p0 = scmp.ne.s32.totalorder %s974_s13, %s980_s16  ;;  %p985_p3 = scmp.lt.s32.totalorder %s974_s13, %s1415_s0 }
  0x25   : > { %p986_p4 = scmp.lt.s32.totalorder %s984_s19, %s980_s16 }
  0x26   : > { %p982_p1 = pnand %p981_p0, %p1185_p13 }
  0x27   : > { %p987_p5 = por %p986_p4, %p985_p3 }
  0x28   : > { %p983_p2 = pneg %p982_p1 }
  0x2a   : > { %p988_p7 = pnand %p987_p5, %p983_p2 }
  0x2c   : > { %991 = shalt.err (!%p988_p7)
}
  0x2d   : > { %s992_s29 = sshra.s32 %s235_s30, 4  ;;  %s1080_s17 = smov [#allocation3]   ;;  %s993_s29 = int_to_ptr.vmem [resolvable:$true] %s992_s29 }
  0x2e   : > { %s999_s12 = scalar_lea.vmem %s993_s29, %s975_s15  ;;  %s1003_s21 = scalar_lea.vmem %s1080_s17, 128 }
  0x2f   : > { %p1000_p8 = scmp.ne.s32.totalorder %s993_s29, %s999_s12  ;;  %p1005_p1 = scmp.lt.s32.totalorder %s1003_s21, %s999_s12 }
  0x31   : > { %p1001_p12 = pnand %p1000_p8, %p1185_p13 }
  0x33   : > { %p1002_p0 = pneg %p1001_p12 }
  0x35   : > { %p1007_p11 = pnand %p1005_p1, %p1002_p0 }
  0x37   : > { %1010 = shalt.err (!%p1007_p11)
}
  0x38   : > { %s1081_s13 = smov 128   ;;  %s1082_s16 = smov 8  }
  0x39   : > { %s1428_s19 = sshll.u32 %s1435_s14, 7 }
  0x3a   : > { %240 = dma.hbm_to_vmem [thread:$0]  (%p1185_p13), %s1196_s11, %s1428_s19, %s235_s30, %s1182_s18, %s1081_s13, %s1081_s13, %s1082_s16  }
  0x3b PF: > { %p859_p2 = scmp.ge.s32.totalorder %s1078_s26, 1  ;;  %p249_p3 = scmp.lt.s32.totalorder %s1078_s26, 3 }
  0x3d   : > { %p250_p4 = pnand %p859_p2, %p249_p3 }
  0x3e   : > { %s1225_s12 = sand.u32 (!%p250_p4), 1, %s1070_s24  }
  0x3f   : > { %253 = sbr.rel (%p250_p4) target bundleno = 854 (0x356), region = 44  ;;  %s860_s15 = sshll.u32 (!%p250_p4), %s1225_s12, 6 }
  0x40   : > { %s256_s22 = scalar_lea.sflag (!%p250_p4), [#allocation4], %s1225_s12  ;;  %s1229_s20 = scalar_lea.vmem (!%p250_p4), [#allocation3], %s860_s15 }
  0x44   : > { %1057 = dma.done.wait (%p1161_p6), %s256_s22, 1024  }
  0x45   : > { %1059 = vsyncadd (%p1161_p6), %s256_s22, 4294966272  ;;  %v458_v0 = vlaneseq  ;;  %p298_p11 = scmp.lt.s32.totalorder %s1143_s5, 1  ;;  %v314_v2 = vld [vmem:[%s1417_s2 + $0x18] sm:$0xff]  ;;  %v313_v3 = vld [vmem:[%s1417_s2 + $0x10] sm:$0xff]  ;;  %vm319_vm0 = vcmask 261120   ;;  %vm405_vm1 = vcmask 130048  }
  0x46   : > { %356 = vmatpush.msra.mxu0 %v314_v2  ;;  %876 = vmatpush.msra.mxu1 %v314_v2  ;;  %v312_v4 = vld [vmem:[%s1417_s2 + $0x8] sm:$0xff]  ;;  %v311_v5 = vld [vmem:[%s1417_s2] sm:$0xff]  ;;  %v1259_v8 = vld [vmem:[%s1229_s20 + $0x10] sm:$0xff]  ;;  %s430_s30 = sld [smem:[#allocation2]]  ;;  %vm571_vm2 = vcmask 1041409   ;;  %vm573_vm3 = vcmask 1042434  }
  0x47   : > { %v459_v1 = vshrl.u32 %v458_v0, 7  ;;  %s299_s14 = scalar_select %p298_p11, %s1143_s5, 1  ;;  %877 = vmatpush.msra.mxu2 %v314_v2  ;;  %878 = vmatpush.msra.mxu3 %v314_v2  ;;  %v1256_v7 = vld [vmem:[%s1229_s20] sm:$0xff]  ;;  %v1268_v11 = vld [vmem:[%s1229_s20 + $0x30] sm:$0xff]  ;;  %v1277_v12 = vld [vmem:[%s1229_s20 + $0x8] sm:$0xff]  ;;  %v1083_v2 = vmov 0  }
  0x48   : > { %357 = vmatpush.msra.mxu0 %v313_v3  ;;  %879 = vmatpush.msra.mxu1 %v313_v3  ;;  %v1262_v9 = vld [vmem:[%s1229_s20 + $0x20] sm:$0xff]  ;;  %v1280_v13 = vld [vmem:[%s1229_s20 + $0x28] sm:$0xff]  ;;  %v1283_v14 = vld [vmem:[%s1229_s20 + $0x18] sm:$0xff]  ;;  %vm575_vm4 = vcmask 1043459   ;;  %vm577_vm5 = vcmask 1044484   ;;  %vm579_vm6 = vcmask 1045509  }
  0x49   : > { %931 = vset.pattern.permute.xlu2 %v459_v1  ;;  %933 = vset.pattern.permute.xlu1 %v459_v1  ;;  %s862_s18 = sshll.u32 %s299_s14, 3  ;;  %v1288_v15 = vld [vmem:[%s1229_s20 + $0x38] sm:$0xff]  ;;  %v937_v16 = vld [vmem:[%s1418_s3] ss:$0 sm:$0xff]  ;;  %vm581_vm7 = vcmask 1046534   ;;  %vm583_vm8 = vcmask 1047559  }
  0x4a   : > { %932 = vset.pattern.permute.xlu0 %v459_v1  ;;  %s301_s21 = scalar_lea.vmem %s1416_s1, %s862_s18  ;;  %880 = vmatpush.msra.mxu2 %v313_v3  ;;  %v938_v21 = vld [vmem:[%s1419_s4] ss:$0 sm:$0xff]  ;;  %vm586_vm9 = vcmask 64512   ;;  %s861_s11 = sshll.u32 %s1225_s12, 3 }
  0x4b   : > { %881 = vmatpush.msra.mxu3 %v313_v3  ;;  %v1253_v6 = vld [vmem:[%s301_s21] sm:$0xff]  ;;  %358 = vmatpush.msra.mxu0 %v312_v4  ;;  %s872_s27 = sshll.u32 %s1143_s5, 3  ;;  %s292_s5 = scalar_lea.vmem [#allocation6], %s861_s11 }
  0x4c   : > { %882 = vmatpush.msra.mxu1 %v312_v4  ;;  %883 = vmatpush.msra.mxu2 %v312_v4  ;;  %v457_v10 = vperm.slane %v1253_v6, 0  ;;  %v471_v45 = vperm.slane %v1253_v6, 2  ;;  %v478_v48 = vperm.slane %v1253_v6, 3  ;;  %v492_v50 = vperm.slane %v1253_v6, 5  ;;  %s762_s17 = scalar_lea.hbm %s1421_s6, %s872_s27  ;;  %s764_s21 = sshll.u32 %s292_s5, 4  ;;  %s765_s21 = int_to_ptr.vmem [resolvable:$true] %s764_s21 }
  0x4d   : > { %884 = vmatpush.msra.mxu3 %v312_v4  ;;  %359 = vmatpush.msra.mxu0 %v311_v5  ;;  %v464_v51 = vperm.slane %v1253_v6, 1  ;;  %v485_v52 = vperm.slane %v1253_v6, 4  ;;  %v506_v54 = vperm.slane %v1253_v6, 7  ;;  %v499_v57 = vperm.slane %v1253_v6, 6  ;;  %s766_s13 = sshll.u32 %s762_s17, 4  ;;  %s752_s16 = scalar_lea.sflag [#allocation5], %s1225_s12  ;;  %s767_s13 = int_to_ptr.hbm [resolvable:$true] %s766_s13 }
  0x4e   : > { %885 = vmatpush.msra.mxu1 %v311_v5  ;;  %886 = vmatpush.msra.mxu2 %v311_v5  ;;  %v431_v3 = vstv %s430_s30  ;;  %s1026_s19 = sshra.s32 %s767_s13, 4  ;;  %s1032_s20 = scalar_lea.hbm %s1421_s6, 16  ;;  %s1027_s19 = int_to_ptr.hbm [resolvable:$true] %s1026_s19 }
  0x4f   : > { %863 = vmatmul.msk.f32.vlgmr.msra.gmra.mxu0 %vm319_vm0, %v1256_v7  ;;  %865 = vmatmul.msk.f32.vlgmr.msra.gmra.mxu1 %vm319_vm0, %v1259_v8  ;;  %s1028_s15 = scalar_lea.hbm %s1027_s19, 8  ;;  %p1033_p7 = scmp.lt.s32.totalorder %s1027_s19, %s1421_s6 }
  0x50   : > { %867 = vmatmul.msk.f32.vlgmr.msra.gmra.mxu2 %vm319_vm0, %v1262_v9  ;;  %887 = vmatpush.msra.mxu3 %v311_v5  ;;  %p1029_p6 = scmp.ne.s32.totalorder %s1027_s19, %s1028_s15  ;;  %p1034_p8 = scmp.lt.s32.totalorder %s1032_s20, %s1028_s15 }
  0x51   : > { %462 = vperm.xlu2 %931, %v457_v10   ;;  %869 = vmatmul.msk.f32.vlgmr.msra.gmra.mxu3 %vm319_vm0, %v1268_v11 }
  0x52   : > { %p1030_p13 = pnand %p1029_p6, %p1166_p9  ;;  %p1035_p12 = por %p1034_p8, %p1033_p7 }
  0x54   : > { %p1031_p5 = pneg %p1030_p13 }
  0x56   : > { %p1036_p0 = pnand %p1035_p12, %p1031_p5 }
  0x57   : > { %864 = vmatmul.msk.f32.gmra.mxu0 %vm319_vm0, %v1277_v12  ;;  %866 = vmatmul.msk.f32.gmra.mxu1 %vm319_vm0, %v1283_v14 }
  0x58   : > { %868 = vmatmul.msk.f32.gmra.mxu2 %vm319_vm0, %v1280_v13 }
  0x59   : > { %870 = vmatmul.msk.f32.gmra.mxu3 %vm319_vm0, %v1288_v15 }
  0xab   : > { %v463_v6 = vpop.permute.xlu2 %462 }
  0xcc   : > { %v361_v17 = vpop.f32.mrf.mxu0  ;;  %v367_v19 = vpop.f32.mrf.mxu1 }
  0xcd   : > { %v362_v18 = vadd.f32 %v937_v16, %v361_v17  ;;  %v368_v20 = vadd.f32 %v937_v16, %v367_v19 }
  0xcf   : > { %939 = vtanh.f32 %v362_v18 }
  0xd0   : > { %941 = vtanh.f32 %v368_v20 }
  0xd3   : > { %v373_v22 = vpop.f32.mrf.mxu2 }
  0xd4   : > { %v374_v23 = vadd.f32 %v937_v16, %v373_v22  ;;  %v364_v24 = vpop.f32.mrf.mxu0  ;;  %v379_v26 = vpop.f32.mrf.mxu3 }
  0xd5   : > { %v940_v25 = vpop.eup %939  ;;  %v380_v28 = vadd.f32 %v937_v16, %v379_v26  ;;  %v365_v30 = vadd.f32 %v937_v16, %v364_v24  ;;  %v370_v43 = vpop.f32.mrf.mxu1 }
  0xd6   : > { %v942_v27 = vpop.eup %941  ;;  %943 = vtanh.f32 %v374_v23  ;;  %v397_v29 = vmul.f32 %v940_v25, %v938_v21  ;;  %v371_v44 = vadd.f32 %v937_v16, %v370_v43 }
  0xd7   : > { %v399_v31 = vmul.f32 %v942_v27, %v938_v21  ;;  %945 = vtanh.f32 %v380_v28 }
  0xd8   : > { %v406_v32 = vsel %vm405_vm1, %v397_v29, 0.0  ;;  %947 = vtanh.f32 %v365_v30 }
  0xd9   : > { %v412_v33 = vsel %vm405_vm1, %v399_v31, 0.0  ;;  %407 = vadd.xlane.f32.xlu0 %v406_v32  ;;  %949 = vtanh.f32 %v371_v44 }
  0xda   : > { %413 = vadd.xlane.f32.xlu1 %v412_v33 }
  0xdb   : > { %v376_v53 = vpop.f32.mrf.mxu2 }
  0xdc   : > { %v944_v34 = vpop.eup %943  ;;  %v377_v55 = vadd.f32 %v937_v16, %v376_v53  ;;  %v382_v56 = vpop.f32.mrf.mxu3 }
  0xdd   : > { %v401_v35 = vmul.f32 %v944_v34, %v938_v21  ;;  %v946_v36 = vpop.eup %945  ;;  %v383_v58 = vadd.f32 %v937_v16, %v382_v56 }
  0xde   : > { %v403_v38 = vmul.f32 %v946_v36, %v938_v21  ;;  %v948_v39 = vpop.eup %947  ;;  %951 = vtanh.f32 %v377_v55 }
  0xdf   : > { %v418_v37 = vsel %vm405_vm1, %v401_v35, 0.0  ;;  %v398_v41 = vmul.f32 %v948_v39, %v938_v21  ;;  %v950_v46 = vpop.eup %949  ;;  %953 = vtanh.f32 %v383_v58 }
  0xe0   : > { %419 = vadd.xlane.f32.xlu2 %v418_v37  ;;  %v424_v40 = vsel %vm405_vm1, %v403_v38, 0.0  ;;  %v400_v47 = vmul.f32 %v950_v46, %v938_v21 }
  0xe1   : > { %425 = vadd.xlane.f32.xlu0 %v424_v40  ;;  %v409_v42 = vsel %vm405_vm1, %v398_v41, 0.0 }
  0xe2   : > { %v415_v49 = vsel %vm405_vm1, %v400_v47, 0.0 }
  0xe4   : > { %v952_v59 = vpop.eup %951 }
  0xe5   : > { %v402_v60 = vmul.f32 %v952_v59, %v938_v21  ;;  %v954_v61 = vpop.eup %953 }
  0xe6   : > { %v404_v63 = vmul.f32 %v954_v61, %v938_v21 }
  0xe7   : > { %v421_v62 = vsel %vm405_vm1, %v402_v60, 0.0 }
  0xe8   : > { %v427_v1 = vsel %vm405_vm1, %v404_v63, 0.0 }
  0xe9   : > { %410 = vadd.xlane.f32.xlu0 %v409_v42 }
  0xf3   : > { %476 = vperm.xlu1 %933, %v471_v45  }
  0xf8   : > { %483 = vperm.xlu2 %931, %v478_v48  }
  0xfb   : > { %497 = vperm.xlu1 %933, %v492_v50  }
  0xfd   : > { %469 = vperm.xlu0 %932, %v464_v51  }
 0x100   : > { %490 = vperm.xlu2 %931, %v485_v52  }
 0x103   : > { %511 = vperm.xlu1 %933, %v506_v54  }
 0x105   : > { %934 = vset.pattern.permute.xlu0 %v1083_v2 }
 0x108   : > { %504 = vperm.xlu2 %931, %v499_v57  }
 0x10b   : > { %935 = vset.pattern.permute.xlu1 %v1083_v2 }
 0x110   : > { %936 = vset.pattern.permute.xlu2 %v1083_v2 }
 0x12d   : > { %416 = vadd.xlane.f32.xlu1 %v415_v49 }
 0x131   : > { %422 = vadd.xlane.f32.xlu2 %v421_v62  ;;  %v562_v62 = vand.u32 127, %v458_v0 }
 0x135   : > { %428 = vadd.xlane.f32.xlu1 %v427_v1 }
 0x14c   : > { %v408_v4 = vpop.xlane.xlu0 %407 }
 0x14d   : > { %v432_v5 = vadd.f32 %v431_v3, %v408_v4  ;;  %v414_v16 = vpop.xlane.xlu1 %413 }
 0x14e   : > { %v434_v19 = vadd.f32 %v431_v3, %v414_v16 }
 0x14f   : > { %v440_v10 = vmul.f32 1.442695, %v432_v5 }
 0x150   : > { %v444_v22 = vmul.f32 1.442695, %v434_v19 }
 0x151   : > { %955 = vpow2.f32 %v440_v10 }
 0x152   : > { %957 = vpow2.f32 %v444_v22 }
 0x153   : > { %v420_v20 = vpop.xlane.xlu2 %419 }
 0x154   : > { %v426_v17 = vpop.xlane.xlu0 %425  ;;  %v436_v24 = vadd.f32 %v431_v3, %v420_v20 }
 0x155   : > { %v438_v43 = vadd.f32 %v431_v3, %v426_v17 }
 0x156   : > { %v448_v27 = vmul.f32 1.442695, %v436_v24 }
 0x157   : > { %v956_v18 = vpop.eup %955  ;;  %v452_v47 = vmul.f32 1.442695, %v438_v43 }
 0x158   : > { %v1317_v21 = vmul.f32 %v956_v18, %v463_v6  ;;  %v958_v29 = vpop.eup %957  ;;  %959 = vpow2.f32 %v448_v27 }
 0x15a   : > { %538 = vperm.xlu0 %934, %v1317_v21  }
 0x15b   : > { %v484_v26 = vpop.permute.xlu2 %483 }
 0x15c   : > { %v411_v23 = vpop.xlane.xlu0 %410 }
 0x15d   : > { %v433_v25 = vadd.f32 %v431_v3, %v411_v23 }
 0x15e   : > { %v960_v33 = vpop.eup %959 }
 0x15f   : > { %v442_v28 = vmul.f32 1.442695, %v433_v25 }
 0x161   : > { %961 = vpow2.f32 %v442_v28 }
 0x163   : > { %v491_v32 = vpop.permute.xlu2 %490 }
 0x164   : > { %v1323_v35 = vmul.f32 %v960_v33, %v491_v32 }
 0x165   : > { %v477_v30 = vpop.permute.xlu1 %476 }
 0x166   : > { %v1320_v31 = vmul.f32 %v958_v29, %v477_v30 }
 0x167   : > { %v962_v34 = vpop.eup %961 }
 0x168   : > { %544 = vperm.xlu1 %935, %v1320_v31  }
 0x16b   : > { %v505_v40 = vpop.permute.xlu2 %504 }
 0x16d   : > { %v498_v38 = vpop.permute.xlu1 %497 }
 0x16f   : > { %v470_v36 = vpop.permute.xlu0 %469 }
 0x170   : > { %550 = vperm.xlu1 %935, %v1323_v35   ;;  %v1326_v37 = vmul.f32 %v962_v34, %v470_v36 }
 0x172   : > { %541 = vperm.xlu2 %936, %v1326_v37  }
 0x175   : > { %v512_v39 = vpop.permute.xlu1 %511 }
 0x1a0   : > { %v417_v41 = vpop.xlane.xlu1 %416 }
 0x1a1   : > { %v435_v42 = vadd.f32 %v431_v3, %v417_v41 }
 0x1a3   : > { %v446_v44 = vmul.f32 1.442695, %v435_v42 }
 0x1a4   : > { %v423_v45 = vpop.xlane.xlu2 %422 }
 0x1a5   : > { %963 = vpow2.f32 %v446_v44  ;;  %v437_v46 = vadd.f32 %v431_v3, %v423_v45 }
 0x1a7   : > { %v450_v48 = vmul.f32 1.442695, %v437_v46 }
 0x1a8   : > { %v429_v49 = vpop.xlane.xlu1 %428 }
 0x1a9   : > { %965 = vpow2.f32 %v450_v48  ;;  %v439_v50 = vadd.f32 %v431_v3, %v429_v49 }
 0x1aa   : > { %967 = vpow2.f32 %v452_v47 }
 0x1ab   : > { %v964_v51 = vpop.eup %963  ;;  %v454_v52 = vmul.f32 1.442695, %v439_v50 }
 0x1ac   : > { %v1329_v53 = vmul.f32 %v964_v51, %v484_v26 }
 0x1ad   : > { %969 = vpow2.f32 %v454_v52 }
 0x1ae   : > { %547 = vperm.xlu2 %936, %v1329_v53  }
 0x1af   : > { %v966_v54 = vpop.eup %965 }
 0x1b0   : > { %v1332_v55 = vmul.f32 %v966_v54, %v498_v38  ;;  %v968_v56 = vpop.eup %967 }
 0x1b1   : > { %v1335_v58 = vmul.f32 %v968_v56, %v505_v40 }
 0x1b2   : > { %553 = vperm.xlu0 %934, %v1332_v55  }
 0x1b3   : > { %v970_v57 = vpop.eup %969 }
 0x1b4   : > { %v1337_v59 = vmul.f32 %v970_v57, %v512_v39 }
 0x1b6   : > { %559 = vperm.xlu1 %935, %v1337_v59   ;;  %556 = vperm.xlu2 %936, %v1335_v58  }
 0x1cc   : > { %v542_v60 = vpop.permute.xlu2 %541  ;;  %v539_v63 = vpop.permute.xlu0 %538 }
 0x1cd   : > { %v564_v2 = vperm.slane %v542_v60, %v562_v62  ;;  %v563_v3 = vperm.slane %v539_v63, %v562_v62 }
 0x1cf   : > { %v572_v10 = vsel %vm571_vm2, %v564_v2, %v563_v3 }
 0x1da   : > { %v545_v61 = vpop.permute.xlu1 %544 }
 0x1db   : > { %v565_v4 = vperm.slane %v545_v61, %v562_v62 }
 0x1dd   : > { %v574_v16 = vsel %vm573_vm3, %v565_v4, %v572_v10 }
 0x1e2   : > { %v551_v6 = vpop.permute.xlu1 %550 }
 0x1e3   : > { %v567_v18 = vperm.slane %v551_v6, %v562_v62 }
 0x208   : > { %v548_v1 = vpop.permute.xlu2 %547 }
 0x209   : > { %v566_v5 = vperm.slane %v548_v1, %v562_v62 }
 0x20b   : > { %v576_v17 = vsel %vm575_vm4, %v566_v5, %v574_v16 }
 0x20c   : > { %v578_v22 = vsel %vm577_vm5, %v567_v18, %v576_v17 }
 0x210   : > { %v557_v19 = vpop.permute.xlu2 %556 }
 0x211   : > { %v569_v24 = vperm.slane %v557_v19, %v562_v62 }
 0x224   : > { %v554_v0 = vpop.permute.xlu0 %553 }
 0x225   : > { %v568_v20 = vperm.slane %v554_v0, %v562_v62 }
 0x227   : > { %v580_v23 = vsel %vm579_vm6, %v568_v20, %v578_v22 }
 0x228   : > { %v560_v25 = vpop.permute.xlu1 %559  ;;  %v582_v27 = vsel %vm581_vm7, %v569_v24, %v580_v23 }
 0x229   : > { %v570_v26 = vperm.slane %v560_v25, %v562_v62 }
 0x22b   : > { %v584_v28 = vsel %vm583_vm8, %v570_v26, %v582_v27 }
 0x22c   : > { %v587_v29 = vsel %vm586_vm9, %v584_v28, 0.0 }
 0x22d   : > { %588 = vadd.xlane.f32.xlu0 %v587_v29 }
 0x2a0   : > { %v589_v30 = vpop.xlane.xlu0 %588 }
 0x2a1   : > { %v590_v32 = vadd.f32 1e-08, %v589_v30 }
 0x2a3   : > { %971 = vrcp.f32 %v590_v32  ;;  %v602_v38 = vand.u32 2147483648, %v590_v32  ;;  %v600_v40 = vand.u32 2147483647, %v590_v32  ;;  %vm596_vm11 = vweird.f32 %v590_v32 }
 0x2a5   : > { %v603_v42 = vor.u32 1.1754944e-38, %v602_v38  ;;  %vm601_vm13 = vcmp.eq.f32.partialorder %v600_v40, 8.507059e+37 }
 0x2a9   : > { %v972_v33 = vpop.eup %971 }
 0x2aa   : > { %v592_v34 = vmul.f32 %v972_v33, %v590_v32  ;;  %vm597_vm10 = vweird.f32 %v972_v33 }
 0x2ab   : > { %vm598_vm12 = vmor %vm596_vm11, %vm597_vm10 }
 0x2ac   : > { %v593_v36 = vsub.f32 1.0, %v592_v34 }
 0x2ae   : > { %v594_v39 = vmul.f32 %v972_v33, %v593_v36 }
 0x2b0   : > { %v595_v41 = vadd.f32 %v972_v33, %v594_v39 }
 0x2b2   : > { %v599_v43 = vsel %vm598_vm12, %v972_v33, %v595_v41 }
 0x2b3   : > { %v604_v44 = vsel %vm601_vm13, %v603_v42, %v599_v43 }
 0x2b4   : > { %v607_v45 = vperm.slane %v604_v44, 1  ;;  %v606_v46 = vperm.slane %v604_v44, 0  ;;  %v609_v49 = vperm.slane %v604_v44, 3  ;;  %v608_v50 = vperm.slane %v604_v44, 2 }
 0x2b5   : > { %v611_v54 = vperm.slane %v604_v44, 5  ;;  %v610_v56 = vperm.slane %v604_v44, 4 }
 0x2b6   : > { %v623_v47 = vmul.f32 %v607_v45, %v1326_v37  ;;  %v622_v48 = vmul.f32 %v606_v46, %v1317_v21  ;;  %v625_v51 = vmul.f32 %v609_v49, %v1329_v53  ;;  %v624_v52 = vmul.f32 %v608_v50, %v1320_v31 }
 0x2b7   : > { %v627_v57 = vmul.f32 %v611_v54, %v1332_v55  ;;  %v626_v60 = vmul.f32 %v610_v56, %v1323_v35  ;;  %v613_v37 = vperm.slane %v604_v44, 7  ;;  %v612_v21 = vperm.slane %v604_v44, 6 }
 0x2b8   : > { %637 = vperm.xlu1 %935, %v623_v47   ;;  %632 = vperm.xlu2 %936, %v622_v48  }
 0x2b9   : > { %v629_v61 = vmul.f32 %v613_v37, %v1337_v59  ;;  %v628_v62 = vmul.f32 %v612_v21, %v1335_v58 }
 0x2c0   : > { %647 = vperm.xlu1 %935, %v625_v51   ;;  %642 = vperm.xlu2 %936, %v624_v52  }
 0x2c8   : > { %657 = vperm.xlu1 %935, %v627_v57   ;;  %652 = vperm.xlu2 %936, %v626_v60  }
 0x2d0   : > { %667 = vperm.xlu1 %935, %v629_v61   ;;  %662 = vperm.xlu2 %936, %v628_v62  }
 0x312   : > { %v633_v53 = vpop.permute.xlu2 %632 }
 0x313   : > { %v670_v1 = vmul.f32 %v633_v53, %v1256_v7 }
 0x315   : > { %v678_v3 = vsel %vm319_vm0, %v670_v1, 0.0 }
 0x316   : > { %v679_v59 = vrot.slane %v678_v3, 4 }
 0x318   : > { %v680_v0 = vadd.f32 %v679_v59, %v678_v3 }
 0x31a   : > { %v643_v31 = vpop.permute.xlu2 %642  ;;  %v681_v25 = vrot.slane %v680_v0, 2 }
 0x31b   : > { %v672_v35 = vmul.f32 %v643_v31, %v1259_v8 }
 0x31c   : > { %v682_v34 = vadd.f32 %v681_v25, %v680_v0 }
 0x31d   : > { %v692_v58 = vsel %vm319_vm0, %v672_v35, 0.0 }
 0x31e   : > { %v693_v18 = vrot.slane %v692_v58, 4  ;;  %v683_v43 = vrot.slane %v682_v34, 1 }
 0x320   : > { %v694_v23 = vadd.f32 %v693_v18, %v692_v58  ;;  %v684_v52 = vadd.f32 %v683_v43, %v682_v34 }
 0x322   : > { %v653_v63 = vpop.permute.xlu2 %652  ;;  %v695_v30 = vrot.slane %v694_v23, 2 }
 0x323   : > { %v674_v6 = vmul.f32 %v653_v63, %v1262_v9 }
 0x324   : > { %v696_v40 = vadd.f32 %v695_v30, %v694_v23 }
 0x326   : > { %v697_v49 = vrot.slane %v696_v40, 1 }
 0x328   : > { %v698_v61 = vadd.f32 %v697_v49, %v696_v40 }
 0x32a   : > { %v638_v2 = vpop.permute.xlu1 %637  ;;  %v663_v10 = vpop.permute.xlu2 %662 }
 0x32b   : > { %v671_v55 = vmul.f32 %v638_v2, %v1277_v12  ;;  %v706_v12 = vsel %vm319_vm0, %v674_v6, 0.0  ;;  %v676_v8 = vmul.f32 %v663_v10, %v1268_v11 }
 0x32c   : > { %v707_v24 = vrot.slane %v706_v12, 4 }
 0x32d   : > { %v685_v4 = vsel %vm319_vm0, %v671_v55, 0.0  ;;  %v720_v9 = vsel %vm319_vm0, %v676_v8, 0.0 }
 0x32e   : > { %v686_v5 = vrot.slane %v685_v4, 4  ;;  %v721_v32 = vrot.slane %v720_v9, 4 }
 0x330   : > { %v687_v16 = vadd.f32 %v686_v5, %v685_v4  ;;  %v722_v42 = vadd.f32 %v721_v32, %v720_v9 }
 0x332   : > { %v648_v17 = vpop.permute.xlu1 %647  ;;  %v688_v20 = vrot.slane %v687_v16, 2 }
 0x333   : > { %v673_v7 = vmul.f32 %v648_v17, %v1283_v14  ;;  %v708_v14 = vadd.f32 %v707_v24, %v706_v12 }
 0x334   : > { %v689_v27 = vadd.f32 %v688_v20, %v687_v16 }
 0x335   : > { %v699_v19 = vsel %vm319_vm0, %v673_v7, 0.0  ;;  %v709_v41 = vrot.slane %v708_v14, 2 }
 0x336   : > { %v700_v22 = vrot.slane %v699_v19, 4  ;;  %v690_v36 = vrot.slane %v689_v27, 1 }
 0x337   : > { %v710_v50 = vadd.f32 %v709_v41, %v708_v14 }
 0x338   : > { %v701_v26 = vadd.f32 %v700_v22, %v699_v19  ;;  %v691_v45 = vadd.f32 %v690_v36, %v689_v27 }
 0x339   : > { %v711_v62 = vrot.slane %v710_v50, 1 }
 0x33a   : > { %v702_v28 = vrot.slane %v701_v26, 2  ;;  %v658_v29 = vpop.permute.xlu1 %657  ;;  %v742_v57 = vsel %vm571_vm2, %v691_v45, %v684_v52 }
 0x33b   : > { %v675_v33 = vmul.f32 %v658_v29, %v1280_v13  ;;  %v723_v13 = vrot.slane %v722_v42, 2  ;;  %v743_v63 = vsel %vm573_vm3, %v698_v61, %v742_v57  ;;  %v712_v55 = vadd.f32 %v711_v62, %v710_v50 }
 0x33c   : > { %v703_v38 = vadd.f32 %v702_v28, %v701_v26 }
 0x33d   : > { %v713_v11 = vsel %vm319_vm0, %v675_v33, 0.0  ;;  %v724_v53 = vadd.f32 %v723_v13, %v722_v42 }
 0x33e   : > { %v714_v39 = vrot.slane %v713_v11, 4  ;;  %v704_v46 = vrot.slane %v703_v38, 1 }
 0x33f   : > { %v725_v35 = vrot.slane %v724_v53, 1 }
 0x340   : > { %v715_v44 = vadd.f32 %v714_v39, %v713_v11  ;;  %v705_v60 = vadd.f32 %v704_v46, %v703_v38 }
 0x341   : > { %v726_v58 = vadd.f32 %v725_v35, %v724_v53 }
 0x342   : > { %v716_v47 = vrot.slane %v715_v44, 2  ;;  %v668_v48 = vpop.permute.xlu1 %667  ;;  %v744_v1 = vsel %vm575_vm4, %v705_v60, %v743_v63 }
 0x343   : > { %v677_v51 = vmul.f32 %v668_v48, %v1288_v15  ;;  %v745_v4 = vsel %vm577_vm5, %v712_v55, %v744_v1 }
 0x344   : > { %v717_v54 = vadd.f32 %v716_v47, %v715_v44 }
 0x345   : > { %v727_v56 = vsel %vm319_vm0, %v677_v51, 0.0 }
 0x346   : > { %v718_v37 = vrot.slane %v717_v54, 1  ;;  %v728_v21 = vrot.slane %v727_v56, 4 }
 0x348   : > { %v729_v31 = vadd.f32 %v728_v21, %v727_v56  ;;  %v719_v15 = vadd.f32 %v718_v37, %v717_v54 }
 0x34a   : > { %v730_v2 = vrot.slane %v729_v31, 2  ;;  %v746_v5 = vsel %vm579_vm6, %v719_v15, %v745_v4 }
 0x34b   : > { %v747_v10 = vsel %vm581_vm7, %v726_v58, %v746_v5 }
 0x34c   : > { %v731_v3 = vadd.f32 %v730_v2, %v729_v31 }
 0x34e   : > { %v732_v59 = vrot.slane %v731_v3, 1 }
 0x350   : > { %v733_v6 = vadd.f32 %v732_v59, %v731_v3 }
 0x352   : > { %v748_v16 = vsel %vm583_vm8, %v733_v6, %v747_v10 }
 0x353   : > { %750 = vst.msk [vmem:[%s292_s5] sm:$0xff] %vm319_vm0, %v748_v16 }
 0x354   : > { %1039 = shalt.err (!%p1036_p0)
}
 0x355   : > { %889 = dma.vmem_to_hbm [thread:$0]  (%p1166_p9), %s765_s21, 128, %s767_s13, %s752_s16  }
 0x356 PF: > { %s778_s12 = sand.u32 1, %s1066_s23   ;;  %p1429_p1 = scmp.ge.s32.totalorder %s1078_s26, 2 }
 0x357   : > { %s779_s11 = scalar_lea.sflag [#allocation5], %s778_s12 }
 0x358   : > { %p892_p2 = pnand %p1429_p1, %p1170_p10 }
 0x35a   : > { %p893_p3 = pneg %p892_p2 }
 0x35c   : > { %1061 = dma.done.wait (%p893_p3), %s779_s11, 128  }
 0x35d   : > { %1063 = vsyncadd (%p893_p3), %s779_s11, 4294967168  ;;  %p20_p4 = scmp.ge.s32.totalorder %s1147_s28, 4   ;;  %s1430_s23 = smov %s1070_s24 }
 0x35e   : > { %s1431_s24 = smov %s1074_s25  ;;  %s1432_s25 = smov %s1159_s7 }
 0x35f   : > { %s1433_s26 = smov %s1147_s28  ;;  %22 = sbr.rel (!%p20_p4) target bundleno = 7 (0x7), region = 92 }
 0x364   :  { %785 = vsyncpa [#allocation4], 1 }
 0x365   :  { %787 = vsyncpa [#allocation4 + $0x1], 1 }
 0x366   :  { %788 = vsyncpa [#allocation5], 1 }
 0x367   :  { %790 = vsyncpa [#allocation5 + $0x1], 1 }

// kernel: tpu_custom_call.1
= control target key start
LH: loop header
LB: loop body
LE: loop exit
PB: predicated region body
PF: predicated region fallthrough
CT: control target
= control target key end

     0   :  { %s1415_s0 = inlined_call_operand.hbm [shape: f32[13,8,32], index: 0, kind: input, shape index: {}]   ;;  %s1416_s1 = inlined_call_operand.vmem [shape: f32[13,8], index: 1, kind: input, shape index: {}]   ;;  %s1417_s2 = inlined_call_operand.vmem [shape: f32[32,16], index: 2, kind: input, shape index: {}]   ;;  %s1418_s3 = inlined_call_operand.vmem [shape: f32[1,16], index: 3, kind: input, shape index: {}]   ;;  %s1419_s4 = inlined_call_operand.vmem [shape: f32[1,16], index: 4, kind: input, shape index: {}]   ;;  %s1420_s5 = inlined_call_operand.<no memory space> [shape: f32[1,1], index: 5, kind: input, shape index: {}]   ;;  %s1421_s6 = inlined_call_operand.hbm [shape: f32[13,32], index: 6, kind: output, shape index: {}]  }
   0x1   :  { %11 = sst [smem:[#allocation2]] %s1420_s5 }
   0x2   :  { %12 = vsyncpa [#allocation4], 0 }
   0x3   :  { %14 = vsyncpa [#allocation4 + $0x1], 0 }
   0x4   :  { %15 = vsyncpa [#allocation5], 0 }
   0x5   :  { %17 = vsyncpa [#allocation5 + $0x1], 0  ;;  %s1122_s23 = smov 0   ;;  %s1124_s24 = smov 0  }
   0x6   :  { %s1126_s25 = smov 0   ;;  %s1128_s26 = smov 0  }
   0x7 LB: > { %s1143_s5 = sadd.s32 4294967295, %s1078_s26   ;;  %s849_s27 = sadd.s32 4294967294, %s1078_s26   ;;  %s1078_s26 = sphi %s1128_s26, %s1433_s26   ;;  %s1074_s25 = sphi %s1126_s25, %s1432_s25   ;;  %s1070_s24 = sphi %s1124_s24, %s1431_s24   ;;  %s1066_s23 = sphi %s1122_s23, %s1430_s23  }
   0x8   : > { %s1147_s28 = sadd.s32 1, %s1078_s26   ;;  %s30_s29 = sadd.s32 1, %s1074_s25 }
   0x9   : > { %s27_s30 = ssub.s32 %s1078_s26, %s1147_s28  ;;  %p37_p0 = scmp.ne.s32.totalorder %s1074_s25, %s1070_s24 }
   0xa   : > { %p28_p1 = scmp.eq.s32.totalorder %s27_s30, 0  ;;  %p38_p2 = scmp.eq.s32.totalorder %s1078_s26, 0 }
   0xb   : > { %p43_p3 = scmp.ne.s32.totalorder %s1070_s24, %s1066_s23  ;;  %p44_p4 = scmp.eq.s32.totalorder %s1143_s5, 0 }
   0xc   : > { %s1159_s7 = scalar_select %p28_p1, %s1074_s25, %s30_s29  }
   0xd   : > { %p39_p5 = por %p38_p2, %p37_p0  ;;  %p1161_p6 = por %p44_p4, %p43_p3 }
   0xe   : > { %p177_p7 = scmp.eq.s32.totalorder %s1143_s5, 1  ;;  %p183_p8 = scmp.eq.s32.totalorder %s849_s27, 1 }
   0xf   : > { %p1423_p11 = scmp.ge.s32.totalorder %s1078_s26, 2 }
  0x10   : > { %p1166_p9 = por %p177_p7, %p37_p0  ;;  %p1170_p10 = por %p183_p8, %p43_p3 }
  0x11   : > { %211 = sbr.rel (%p1423_p11) target bundleno = 59 (0x3b), region = 32 }
  0x16   : > { %214 = sbr.rel (!%p39_p5) target bundleno = 59 (0x3b), region = 36  ;;  %s215_s11 = sand.u32 (%p39_p5), 1, %s1074_s25  }
  0x17   : > { %s853_s12 = sshll.u32 (%p39_p5), %s1078_s26, 3  ;;  %s852_s13 = sshll.u32 (%p39_p5), %s215_s11, 6 }
  0x18   : > { %s221_s14 = ssub.s32 (%p39_p5), 13, %s853_s12  ;;  %s1182_s18 = scalar_lea.sflag (%p39_p5), [#allocation4], %s215_s11 }
  0x19   : > { %p222_p12 = scmp.lt.s32.totalorder (%p39_p5), %s221_s14, 8  ;;  %s219_s19 = scalar_lea.vmem (%p39_p5), [#allocation3], %s852_s13 }
  0x1b   : > { %s1435_s14 = smov (!%p222_p12, %s221_s14), 8 }
  0x1c   : > { %s854_s15 = sshll.u32 %s1435_s14, 3 }
  0x1d   : > { %s225_s16 = ssub.s32 64, %s854_s15 }
  0x1e   : > { %s226_s17 = sshll.u32 %s225_s16, 4 }
  0x1f   : > { %227 = vsyncadd %s1182_s18, %s226_s17  ;;  %p1185_p13 = scmp.ne.s32.totalorder %s854_s15, 0  ;;  %s875_s21 = sshll.u32 %s1078_s26, 6 }
  0x20   : > { %s230_s29 = scalar_lea.hbm %s1415_s0, %s875_s21  ;;  %s1193_s30 = sshll.u32 %s219_s19, 4  ;;  %s235_s30 = int_to_ptr.vmem [resolvable:$true] %s1193_s30 }
  0x21   : > { %s232_s11 = sshll.u32 %s230_s29, 4  ;;  %s1422_s12 = sshll.u32 %s1435_s14, 7  ;;  %s1196_s11 = int_to_ptr.hbm [resolvable:$true] %s232_s11 }
  0x22   : > { %s973_s13 = sshra.s32 %s1196_s11, 4  ;;  %s975_s15 = sshrl.u32 %s1422_s12, 4  ;;  %s974_s13 = int_to_ptr.hbm [resolvable:$true] %s973_s13 }
  0x23   : > { %s980_s16 = scalar_lea.hbm %s974_s13, %s975_s15  ;;  %s984_s19 = scalar_lea.hbm %s1415_s0, 104 }
  0x24   : > { %p981_p0 = scmp.ne.s32.totalorder %s974_s13, %s980_s16  ;;  %p985_p3 = scmp.lt.s32.totalorder %s974_s13, %s1415_s0 }
  0x25   : > { %p986_p4 = scmp.lt.s32.totalorder %s984_s19, %s980_s16 }
  0x26   : > { %p982_p1 = pnand %p981_p0, %p1185_p13 }
  0x27   : > { %p987_p5 = por %p986_p4, %p985_p3 }
  0x28   : > { %p983_p2 = pneg %p982_p1 }
  0x2a   : > { %p988_p7 = pnand %p987_p5, %p983_p2 }
  0x2c   : > { %991 = shalt.err (!%p988_p7)
}
  0x2d   : > { %s992_s29 = sshra.s32 %s235_s30, 4  ;;  %s1080_s17 = smov [#allocation3]   ;;  %s993_s29 = int_to_ptr.vmem [resolvable:$true] %s992_s29 }
  0x2e   : > { %s999_s12 = scalar_lea.vmem %s993_s29, %s975_s15  ;;  %s1003_s21 = scalar_lea.vmem %s1080_s17, 128 }
  0x2f   : > { %p1000_p8 = scmp.ne.s32.totalorder %s993_s29, %s999_s12  ;;  %p1005_p1 = scmp.lt.s32.totalorder %s1003_s21, %s999_s12 }
  0x31   : > { %p1001_p12 = pnand %p1000_p8, %p1185_p13 }
  0x33   : > { %p1002_p0 = pneg %p1001_p12 }
  0x35   : > { %p1007_p11 = pnand %p1005_p1, %p1002_p0 }
  0x37   : > { %1010 = shalt.err (!%p1007_p11)
}
  0x38   : > { %s1081_s13 = smov 128   ;;  %s1082_s16 = smov 8  }
  0x39   : > { %s1428_s19 = sshll.u32 %s1435_s14, 7 }
  0x3a   : > { %240 = dma.hbm_to_vmem [thread:$0]  (%p1185_p13), %s1196_s11, %s1428_s19, %s235_s30, %s1182_s18, %s1081_s13, %s1081_s13, %s1082_s16  }
  0x3b PF: > { %p859_p2 = scmp.ge.s32.totalorder %s1078_s26, 1  ;;  %p249_p3 = scmp.lt.s32.totalorder %s1078_s26, 3 }
  0x3d   : > { %p250_p4 = pnand %p859_p2, %p249_p3 }
  0x3e   : > { %s1225_s12 = sand.u32 (!%p250_p4), 1, %s1070_s24  }
  0x3f   : > { %253 = sbr.rel (%p250_p4) target bundleno = 854 (0x356), region = 44  ;;  %s860_s15 = sshll.u32 (!%p250_p4), %s1225_s12, 6 }
  0x40   : > { %s256_s22 = scalar_lea.sflag (!%p250_p4), [#allocation4], %s1225_s12  ;;  %s1229_s20 = scalar_lea.vmem (!%p250_p4), [#allocation3], %s860_s15 }
  0x44   : > { %1057 = dma.done.wait (%p1161_p6), %s256_s22, 1024  }
  0x45   : > { %1059 = vsyncadd (%p1161_p6), %s256_s22, 4294966272  ;;  %v458_v0 = vlaneseq  ;;  %p298_p11 = scmp.lt.s32.totalorder %s1143_s5, 1  ;;  %v314_v2 = vld [vmem:[%s1417_s2 + $0x18] sm:$0xff]  ;;  %v313_v3 = vld [vmem:[%s1417_s2 + $0x10] sm:$0xff]  ;;  %vm319_vm0 = vcmask 261120   ;;  %vm405_vm1 = vcmask 130048  }
  0x46   : > { %356 = vmatpush.msra.mxu0 %v314_v2  ;;  %876 = vmatpush.msra.mxu1 %v314_v2  ;;  %v312_v4 = vld [vmem:[%s1417_s2 + $0x8] sm:$0xff]  ;;  %v311_v5 = vld [vmem:[%s1417_s2] sm:$0xff]  ;;  %v1259_v8 = vld [vmem:[%s1229_s20 + $0x10] sm:$0xff]  ;;  %s430_s30 = sld [smem:[#allocation2]]  ;;  %vm571_vm2 = vcmask 1041409   ;;  %vm573_vm3 = vcmask 1042434  }
  0x47   : > { %v459_v1 = vshrl.u32 %v458_v0, 7  ;;  %s299_s14 = scalar_select %p298_p11, %s1143_s5, 1  ;;  %877 = vmatpush.msra.mxu2 %v314_v2  ;;  %878 = vmatpush.msra.mxu3 %v314_v2  ;;  %v1256_v7 = vld [vmem:[%s1229_s20] sm:$0xff]  ;;  %v1268_v11 = vld [vmem:[%s1229_s20 + $0x30] sm:$0xff]  ;;  %v1277_v12 = vld [vmem:[%s1229_s20 + $0x8] sm:$0xff]  ;;  %v1083_v2 = vmov 0  }
  0x48   : > { %357 = vmatpush.msra.mxu0 %v313_v3  ;;  %879 = vmatpush.msra.mxu1 %v313_v3  ;;  %v1262_v9 = vld [vmem:[%s1229_s20 + $0x20] sm:$0xff]  ;;  %v1280_v13 = vld [vmem:[%s1229_s20 + $0x28] sm:$0xff]  ;;  %v1283_v14 = vld [vmem:[%s1229_s20 + $0x18] sm:$0xff]  ;;  %vm575_vm4 = vcmask 1043459   ;;  %vm577_vm5 = vcmask 1044484   ;;  %vm579_vm6 = vcmask 1045509  }
  0x49   : > { %931 = vset.pattern.permute.xlu2 %v459_v1  ;;  %933 = vset.pattern.permute.xlu1 %v459_v1  ;;  %s862_s18 = sshll.u32 %s299_s14, 3  ;;  %v1288_v15 = vld [vmem:[%s1229_s20 + $0x38] sm:$0xff]  ;;  %v937_v16 = vld [vmem:[%s1418_s3] ss:$0 sm:$0xff]  ;;  %vm581_vm7 = vcmask 1046534   ;;  %vm583_vm8 = vcmask 1047559  }
  0x4a   : > { %932 = vset.pattern.permute.xlu0 %v459_v1  ;;  %s301_s21 = scalar_lea.vmem %s1416_s1, %s862_s18  ;;  %880 = vmatpush.msra.mxu2 %v313_v3  ;;  %v938_v21 = vld [vmem:[%s1419_s4] ss:$0 sm:$0xff]  ;;  %vm586_vm9 = vcmask 64512   ;;  %s861_s11 = sshll.u32 %s1225_s12, 3 }
  0x4b   : > { %881 = vmatpush.msra.mxu3 %v313_v3  ;;  %v1253_v6 = vld [vmem:[%s301_s21] sm:$0xff]  ;;  %358 = vmatpush.msra.mxu0 %v312_v4  ;;  %s872_s27 = sshll.u32 %s1143_s5, 3  ;;  %s292_s5 = scalar_lea.vmem [#allocation6], %s861_s11 }
  0x4c   : > { %882 = vmatpush.msra.mxu1 %v312_v4  ;;  %883 = vmatpush.msra.mxu2 %v312_v4  ;;  %v457_v10 = vperm.slane %v1253_v6, 0  ;;  %v471_v45 = vperm.slane %v1253_v6, 2  ;;  %v478_v48 = vperm.slane %v1253_v6, 3  ;;  %v492_v50 = vperm.slane %v1253_v6, 5  ;;  %s762_s17 = scalar_lea.hbm %s1421_s6, %s872_s27  ;;  %s764_s21 = sshll.u32 %s292_s5, 4  ;;  %s765_s21 = int_to_ptr.vmem [resolvable:$true] %s764_s21 }
  0x4d   : > { %884 = vmatpush.msra.mxu3 %v312_v4  ;;  %359 = vmatpush.msra.mxu0 %v311_v5  ;;  %v464_v51 = vperm.slane %v1253_v6, 1  ;;  %v485_v52 = vperm.slane %v1253_v6, 4  ;;  %v506_v54 = vperm.slane %v1253_v6, 7  ;;  %v499_v57 = vperm.slane %v1253_v6, 6  ;;  %s766_s13 = sshll.u32 %s762_s17, 4  ;;  %s752_s16 = scalar_lea.sflag [#allocation5], %s1225_s12  ;;  %s767_s13 = int_to_ptr.hbm [resolvable:$true] %s766_s13 }
  0x4e   : > { %885 = vmatpush.msra.mxu1 %v311_v5  ;;  %886 = vmatpush.msra.mxu2 %v311_v5  ;;  %v431_v3 = vstv %s430_s30  ;;  %s1026_s19 = sshra.s32 %s767_s13, 4  ;;  %s1032_s20 = scalar_lea.hbm %s1421_s6, 16  ;;  %s1027_s19 = int_to_ptr.hbm [resolvable:$true] %s1026_s19 }
  0x4f   : > { %863 = vmatmul.msk.f32.vlgmr.msra.gmra.mxu0 %vm319_vm0, %v1256_v7  ;;  %865 = vmatmul.msk.f32.vlgmr.msra.gmra.mxu1 %vm319_vm0, %v1259_v8  ;;  %s1028_s15 = scalar_lea.hbm %s1027_s19, 8  ;;  %p1033_p7 = scmp.lt.s32.totalorder %s1027_s19, %s1421_s6 }
  0x50   : > { %867 = vmatmul.msk.f32.vlgmr.msra.gmra.mxu2 %vm319_vm0, %v1262_v9  ;;  %887 = vmatpush.msra.mxu3 %v311_v5  ;;  %p1029_p6 = scmp.ne.s32.totalorder %s1027_s19, %s1028_s15  ;;  %p1034_p8 = scmp.lt.s32.totalorder %s1032_s20, %s1028_s15 }
  0x51   : > { %462 = vperm.xlu2 %931, %v457_v10   ;;  %869 = vmatmul.msk.f32.vlgmr.msra.gmra.mxu3 %vm319_vm0, %v1268_v11 }
  0x52   : > { %p1030_p13 = pnand %p1029_p6, %p1166_p9  ;;  %p1035_p12 = por %p1034_p8, %p1033_p7 }
  0x54   : > { %p1031_p5 = pneg %p1030_p13 }
  0x56   : > { %p1036_p0 = pnand %p1035_p12, %p1031_p5 }
  0x57   : > { %864 = vmatmul.msk.f32.gmra.mxu0 %vm319_vm0, %v1277_v12  ;;  %866 = vmatmul.msk.f32.gmra.mxu1 %vm319_vm0, %v1283_v14 }
  0x58   : > { %868 = vmatmul.msk.f32.gmra.mxu2 %vm319_vm0, %v1280_v13 }
  0x59   : > { %870 = vmatmul.msk.f32.gmra.mxu3 %vm319_vm0, %v1288_v15 }
  0xab   : > { %v463_v6 = vpop.permute.xlu2 %462 }
  0xcc   : > { %v361_v17 = vpop.f32.mrf.mxu0  ;;  %v367_v19 = vpop.f32.mrf.mxu1 }
  0xcd   : > { %v362_v18 = vadd.f32 %v937_v16, %v361_v17  ;;  %v368_v20 = vadd.f32 %v937_v16, %v367_v19 }
  0xcf   : > { %939 = vtanh.f32 %v362_v18 }
  0xd0   : > { %941 = vtanh.f32 %v368_v20 }
  0xd3   : > { %v373_v22 = vpop.f32.mrf.mxu2 }
  0xd4   : > { %v374_v23 = vadd.f32 %v937_v16, %v373_v22  ;;  %v364_v24 = vpop.f32.mrf.mxu0  ;;  %v379_v26 = vpop.f32.mrf.mxu3 }
  0xd5   : > { %v940_v25 = vpop.eup %939  ;;  %v380_v28 = vadd.f32 %v937_v16, %v379_v26  ;;  %v365_v30 = vadd.f32 %v937_v16, %v364_v24  ;;  %v370_v43 = vpop.f32.mrf.mxu1 }
  0xd6   : > { %v942_v27 = vpop.eup %941  ;;  %943 = vtanh.f32 %v374_v23  ;;  %v397_v29 = vmul.f32 %v940_v25, %v938_v21  ;;  %v371_v44 = vadd.f32 %v937_v16, %v370_v43 }
  0xd7   : > { %v399_v31 = vmul.f32 %v942_v27, %v938_v21  ;;  %945 = vtanh.f32 %v380_v28 }
  0xd8   : > { %v406_v32 = vsel %vm405_vm1, %v397_v29, 0.0  ;;  %947 = vtanh.f32 %v365_v30 }
  0xd9   : > { %v412_v33 = vsel %vm405_vm1, %v399_v31, 0.0  ;;  %407 = vadd.xlane.f32.xlu0 %v406_v32  ;;  %949 = vtanh.f32 %v371_v44 }
  0xda   : > { %413 = vadd.xlane.f32.xlu1 %v412_v33 }
  0xdb   : > { %v376_v53 = vpop.f32.mrf.mxu2 }
  0xdc   : > { %v944_v34 = vpop.eup %943  ;;  %v377_v55 = vadd.f32 %v937_v16, %v376_v53  ;;  %v382_v56 = vpop.f32.mrf.mxu3 }
  0xdd   : > { %v401_v35 = vmul.f32 %v944_v34, %v938_v21  ;;  %v946_v36 = vpop.eup %945  ;;  %v383_v58 = vadd.f32 %v937_v16, %v382_v56 }
  0xde   : > { %v403_v38 = vmul.f32 %v946_v36, %v938_v21  ;;  %v948_v39 = vpop.eup %947  ;;  %951 = vtanh.f32 %v377_v55 }
  0xdf   : > { %v418_v37 = vsel %vm405_vm1, %v401_v35, 0.0  ;;  %v398_v41 = vmul.f32 %v948_v39, %v938_v21  ;;  %v950_v46 = vpop.eup %949  ;;  %953 = vtanh.f32 %v383_v58 }
  0xe0   : > { %419 = vadd.xlane.f32.xlu2 %v418_v37  ;;  %v424_v40 = vsel %vm405_vm1, %v403_v38, 0.0  ;;  %v400_v47 = vmul.f32 %v950_v46, %v938_v21 }
  0xe1   : > { %425 = vadd.xlane.f32.xlu0 %v424_v40  ;;  %v409_v42 = vsel %vm405_vm1, %v398_v41, 0.0 }
  0xe2   : > { %v415_v49 = vsel %vm405_vm1, %v400_v47, 0.0 }
  0xe4   : > { %v952_v59 = vpop.eup %951 }
  0xe5   : > { %v402_v60 = vmul.f32 %v952_v59, %v938_v21  ;;  %v954_v61 = vpop.eup %953 }
  0xe6   : > { %v404_v63 = vmul.f32 %v954_v61, %v938_v21 }
  0xe7   : > { %v421_v62 = vsel %vm405_vm1, %v402_v60, 0.0 }
  0xe8   : > { %v427_v1 = vsel %vm405_vm1, %v404_v63, 0.0 }
  0xe9   : > { %410 = vadd.xlane.f32.xlu0 %v409_v42 }
  0xf3   : > { %476 = vperm.xlu1 %933, %v471_v45  }
  0xf8   : > { %483 = vperm.xlu2 %931, %v478_v48  }
  0xfb   : > { %497 = vperm.xlu1 %933, %v492_v50  }
  0xfd   : > { %469 = vperm.xlu0 %932, %v464_v51  }
 0x100   : > { %490 = vperm.xlu2 %931, %v485_v52  }
 0x103   : > { %511 = vperm.xlu1 %933, %v506_v54  }
 0x105   : > { %934 = vset.pattern.permute.xlu0 %v1083_v2 }
 0x108   : > { %504 = vperm.xlu2 %931, %v499_v57  }
 0x10b   : > { %935 = vset.pattern.permute.xlu1 %v1083_v2 }
 0x110   : > { %936 = vset.pattern.permute.xlu2 %v1083_v2 }
 0x12d   : > { %416 = vadd.xlane.f32.xlu1 %v415_v49 }
 0x131   : > { %422 = vadd.xlane.f32.xlu2 %v421_v62  ;;  %v562_v62 = vand.u32 127, %v458_v0 }
 0x135   : > { %428 = vadd.xlane.f32.xlu1 %v427_v1 }
 0x14c   : > { %v408_v4 = vpop.xlane.xlu0 %407 }
 0x14d   : > { %v432_v5 = vadd.f32 %v431_v3, %v408_v4  ;;  %v414_v16 = vpop.xlane.xlu1 %413 }
 0x14e   : > { %v434_v19 = vadd.f32 %v431_v3, %v414_v16 }
 0x14f   : > { %v440_v10 = vmul.f32 1.442695, %v432_v5 }
 0x150   : > { %v444_v22 = vmul.f32 1.442695, %v434_v19 }
 0x151   : > { %955 = vpow2.f32 %v440_v10 }
 0x152   : > { %957 = vpow2.f32 %v444_v22 }
 0x153   : > { %v420_v20 = vpop.xlane.xlu2 %419 }
 0x154   : > { %v426_v17 = vpop.xlane.xlu0 %425  ;;  %v436_v24 = vadd.f32 %v431_v3, %v420_v20 }
 0x155   : > { %v438_v43 = vadd.f32 %v431_v3, %v426_v17 }
 0x156   : > { %v448_v27 = vmul.f32 1.442695, %v436_v24 }
 0x157   : > { %v956_v18 = vpop.eup %955  ;;  %v452_v47 = vmul.f32 1.442695, %v438_v43 }
 0x158   : > { %v1317_v21 = vmul.f32 %v956_v18, %v463_v6  ;;  %v958_v29 = vpop.eup %957  ;;  %959 = vpow2.f32 %v448_v27 }
 0x15a   : > { %538 = vperm.xlu0 %934, %v1317_v21  }
 0x15b   : > { %v484_v26 = vpop.permute.xlu2 %483 }
 0x15c   : > { %v411_v23 = vpop.xlane.xlu0 %410 }
 0x15d   : > { %v433_v25 = vadd.f32 %v431_v3, %v411_v23 }
 0x15e   : > { %v960_v33 = vpop.eup %959 }
 0x15f   : > { %v442_v28 = vmul.f32 1.442695, %v433_v25 }
 0x161   : > { %961 = vpow2.f32 %v442_v28 }
 0x163   : > { %v491_v32 = vpop.permute.xlu2 %490 }
 0x164   : > { %v1323_v35 = vmul.f32 %v960_v33, %v491_v32 }
 0x165   : > { %v477_v30 = vpop.permute.xlu1 %476 }
 0x166   : > { %v1320_v31 = vmul.f32 %v958_v29, %v477_v30 }
 0x167   : > { %v962_v34 = vpop.eup %961 }
 0x168   : > { %544 = vperm.xlu1 %935, %v1320_v31  }
 0x16b   : > { %v505_v40 = vpop.permute.xlu2 %504 }
 0x16d   : > { %v498_v38 = vpop.permute.xlu1 %497 }
 0x16f   : > { %v470_v36 = vpop.permute.xlu0 %469 }
 0x170   : > { %550 = vperm.xlu1 %935, %v1323_v35   ;;  %v1326_v37 = vmul.f32 %v962_v34, %v470_v36 }
 0x172   : > { %541 = vperm.xlu2 %936, %v1326_v37  }
 0x175   : > { %v512_v39 = vpop.permute.xlu1 %511 }
 0x1a0   : > { %v417_v41 = vpop.xlane.xlu1 %416 }
 0x1a1   : > { %v435_v42 = vadd.f32 %v431_v3, %v417_v41 }
 0x1a3   : > { %v446_v44 = vmul.f32 1.442695, %v435_v42 }
 0x1a4   : > { %v423_v45 = vpop.xlane.xlu2 %422 }
 0x1a5   : > { %963 = vpow2.f32 %v446_v44  ;;  %v437_v46 = vadd.f32 %v431_v3, %v423_v45 }
 0x1a7   : > { %v450_v48 = vmul.f32 1.442695, %v437_v46 }
 0x1a8   : > { %v429_v49 = vpop.xlane.xlu1 %428 }
 0x1a9   : > { %965 = vpow2.f32 %v450_v48  ;;  %v439_v50 = vadd.f32 %v431_v3, %v429_v49 }
 0x1aa   : > { %967 = vpow2.f32 %v452_v47 }
 0x1ab   : > { %v964_v51 = vpop.eup %963  ;;  %v454_v52 = vmul.f32 1.442695, %v439_v50 }
 0x1ac   : > { %v1329_v53 = vmul.f32 %v964_v51, %v484_v26 }
 0x1ad   : > { %969 = vpow2.f32 %v454_v52 }
 0x1ae   : > { %547 = vperm.xlu2 %936, %v1329_v53  }
 0x1af   : > { %v966_v54 = vpop.eup %965 }
 0x1b0   : > { %v1332_v55 = vmul.f32 %v966_v54, %v498_v38  ;;  %v968_v56 = vpop.eup %967 }
 0x1b1   : > { %v1335_v58 = vmul.f32 %v968_v56, %v505_v40 }
 0x1b2   : > { %553 = vperm.xlu0 %934, %v1332_v55  }
 0x1b3   : > { %v970_v57 = vpop.eup %969 }
 0x1b4   : > { %v1337_v59 = vmul.f32 %v970_v57, %v512_v39 }
 0x1b6   : > { %559 = vperm.xlu1 %935, %v1337_v59   ;;  %556 = vperm.xlu2 %936, %v1335_v58  }
 0x1cc   : > { %v542_v60 = vpop.permute.xlu2 %541  ;;  %v539_v63 = vpop.permute.xlu0 %538 }
 0x1cd   : > { %v564_v2 = vperm.slane %v542_v60, %v562_v62  ;;  %v563_v3 = vperm.slane %v539_v63, %v562_v62 }
 0x1cf   : > { %v572_v10 = vsel %vm571_vm2, %v564_v2, %v563_v3 }
 0x1da   : > { %v545_v61 = vpop.permute.xlu1 %544 }
 0x1db   : > { %v565_v4 = vperm.slane %v545_v61, %v562_v62 }
 0x1dd   : > { %v574_v16 = vsel %vm573_vm3, %v565_v4, %v572_v10 }
 0x1e2   : > { %v551_v6 = vpop.permute.xlu1 %550 }
 0x1e3   : > { %v567_v18 = vperm.slane %v551_v6, %v562_v62 }
 0x208   : > { %v548_v1 = vpop.permute.xlu2 %547 }
 0x209   : > { %v566_v5 = vperm.slane %v548_v1, %v562_v62 }
 0x20b   : > { %v576_v17 = vsel %vm575_vm4, %v566_v5, %v574_v16 }
 0x20c   : > { %v578_v22 = vsel %vm577_vm5, %v567_v18, %v576_v17 }
 0x210   : > { %v557_v19 = vpop.permute.xlu2 %556 }
 0x211   : > { %v569_v24 = vperm.slane %v557_v19, %v562_v62 }
 0x224   : > { %v554_v0 = vpop.permute.xlu0 %553 }
 0x225   : > { %v568_v20 = vperm.slane %v554_v0, %v562_v62 }
 0x227   : > { %v580_v23 = vsel %vm579_vm6, %v568_v20, %v578_v22 }
 0x228   : > { %v560_v25 = vpop.permute.xlu1 %559  ;;  %v582_v27 = vsel %vm581_vm7, %v569_v24, %v580_v23 }
 0x229   : > { %v570_v26 = vperm.slane %v560_v25, %v562_v62 }
 0x22b   : > { %v584_v28 = vsel %vm583_vm8, %v570_v26, %v582_v27 }
 0x22c   : > { %v587_v29 = vsel %vm586_vm9, %v584_v28, 0.0 }
 0x22d   : > { %588 = vadd.xlane.f32.xlu0 %v587_v29 }
 0x2a0   : > { %v589_v30 = vpop.xlane.xlu0 %588 }
 0x2a1   : > { %v590_v32 = vadd.f32 1e-08, %v589_v30 }
 0x2a3   : > { %971 = vrcp.f32 %v590_v32  ;;  %v602_v38 = vand.u32 2147483648, %v590_v32  ;;  %v600_v40 = vand.u32 2147483647, %v590_v32  ;;  %vm596_vm11 = vweird.f32 %v590_v32 }
 0x2a5   : > { %v603_v42 = vor.u32 1.1754944e-38, %v602_v38  ;;  %vm601_vm13 = vcmp.eq.f32.partialorder %v600_v40, 8.507059e+37 }
 0x2a9   : > { %v972_v33 = vpop.eup %971 }
 0x2aa   : > { %v592_v34 = vmul.f32 %v972_v33, %v590_v32  ;;  %vm597_vm10 = vweird.f32 %v972_v33 }
 0x2ab   : > { %vm598_vm12 = vmor %vm596_vm11, %vm597_vm10 }
 0x2ac   : > { %v593_v36 = vsub.f32 1.0, %v592_v34 }
 0x2ae   : > { %v594_v39 = vmul.f32 %v972_v33, %v593_v36 }
 0x2b0   : > { %v595_v41 = vadd.f32 %v972_v33, %v594_v39 }
 0x2b2   : > { %v599_v43 = vsel %vm598_vm12, %v972_v33, %v595_v41 }
 0x2b3   : > { %v604_v44 = vsel %vm601_vm13, %v603_v42, %v599_v43 }
 0x2b4   : > { %v607_v45 = vperm.slane %v604_v44, 1  ;;  %v606_v46 = vperm.slane %v604_v44, 0  ;;  %v609_v49 = vperm.slane %v604_v44, 3  ;;  %v608_v50 = vperm.slane %v604_v44, 2 }
 0x2b5   : > { %v611_v54 = vperm.slane %v604_v44, 5  ;;  %v610_v56 = vperm.slane %v604_v44, 4 }
 0x2b6   : > { %v623_v47 = vmul.f32 %v607_v45, %v1326_v37  ;;  %v622_v48 = vmul.f32 %v606_v46, %v1317_v21  ;;  %v625_v51 = vmul.f32 %v609_v49, %v1329_v53  ;;  %v624_v52 = vmul.f32 %v608_v50, %v1320_v31 }
 0x2b7   : > { %v627_v57 = vmul.f32 %v611_v54, %v1332_v55  ;;  %v626_v60 = vmul.f32 %v610_v56, %v1323_v35  ;;  %v613_v37 = vperm.slane %v604_v44, 7  ;;  %v612_v21 = vperm.slane %v604_v44, 6 }
 0x2b8   : > { %637 = vperm.xlu1 %935, %v623_v47   ;;  %632 = vperm.xlu2 %936, %v622_v48  }
 0x2b9   : > { %v629_v61 = vmul.f32 %v613_v37, %v1337_v59  ;;  %v628_v62 = vmul.f32 %v612_v21, %v1335_v58 }
 0x2c0   : > { %647 = vperm.xlu1 %935, %v625_v51   ;;  %642 = vperm.xlu2 %936, %v624_v52  }
 0x2c8   : > { %657 = vperm.xlu1 %935, %v627_v57   ;;  %652 = vperm.xlu2 %936, %v626_v60  }
 0x2d0   : > { %667 = vperm.xlu1 %935, %v629_v61   ;;  %662 = vperm.xlu2 %936, %v628_v62  }
 0x312   : > { %v633_v53 = vpop.permute.xlu2 %632 }
 0x313   : > { %v670_v1 = vmul.f32 %v633_v53, %v1256_v7 }
 0x315   : > { %v678_v3 = vsel %vm319_vm0, %v670_v1, 0.0 }
 0x316   : > { %v679_v59 = vrot.slane %v678_v3, 4 }
 0x318   : > { %v680_v0 = vadd.f32 %v679_v59, %v678_v3 }
 0x31a   : > { %v643_v31 = vpop.permute.xlu2 %642  ;;  %v681_v25 = vrot.slane %v680_v0, 2 }
 0x31b   : > { %v672_v35 = vmul.f32 %v643_v31, %v1259_v8 }
 0x31c   : > { %v682_v34 = vadd.f32 %v681_v25, %v680_v0 }
 0x31d   : > { %v692_v58 = vsel %vm319_vm0, %v672_v35, 0.0 }
 0x31e   : > { %v693_v18 = vrot.slane %v692_v58, 4  ;;  %v683_v43 = vrot.slane %v682_v34, 1 }
 0x320   : > { %v694_v23 = vadd.f32 %v693_v18, %v692_v58  ;;  %v684_v52 = vadd.f32 %v683_v43, %v682_v34 }
 0x322   : > { %v653_v63 = vpop.permute.xlu2 %652  ;;  %v695_v30 = vrot.slane %v694_v23, 2 }
 0x323   : > { %v674_v6 = vmul.f32 %v653_v63, %v1262_v9 }
 0x324   : > { %v696_v40 = vadd.f32 %v695_v30, %v694_v23 }
 0x326   : > { %v697_v49 = vrot.slane %v696_v40, 1 }
 0x328   : > { %v698_v61 = vadd.f32 %v697_v49, %v696_v40 }
 0x32a   : > { %v638_v2 = vpop.permute.xlu1 %637  ;;  %v663_v10 = vpop.permute.xlu2 %662 }
 0x32b   : > { %v671_v55 = vmul.f32 %v638_v2, %v1277_v12  ;;  %v706_v12 = vsel %vm319_vm0, %v674_v6, 0.0  ;;  %v676_v8 = vmul.f32 %v663_v10, %v1268_v11 }
 0x32c   : > { %v707_v24 = vrot.slane %v706_v12, 4 }
 0x32d   : > { %v685_v4 = vsel %vm319_vm0, %v671_v55, 0.0  ;;  %v720_v9 = vsel %vm319_vm0, %v676_v8, 0.0 }
 0x32e   : > { %v686_v5 = vrot.slane %v685_v4, 4  ;;  %v721_v32 = vrot.slane %v720_v9, 4 }
 0x330   : > { %v687_v16 = vadd.f32 %v686_v5, %v685_v4  ;;  %v722_v42 = vadd.f32 %v721_v32, %v720_v9 }
 0x332   : > { %v648_v17 = vpop.permute.xlu1 %647  ;;  %v688_v20 = vrot.slane %v687_v16, 2 }
 0x333   : > { %v673_v7 = vmul.f32 %v648_v17, %v1283_v14  ;;  %v708_v14 = vadd.f32 %v707_v24, %v706_v12 }
 0x334   : > { %v689_v27 = vadd.f32 %v688_v20, %v687_v16 }
 0x335   : > { %v699_v19 = vsel %vm319_vm0, %v673_v7, 0.0  ;;  %v709_v41 = vrot.slane %v708_v14, 2 }
 0x336   : > { %v700_v22 = vrot.slane %v699_v19, 4  ;;  %v690_v36 = vrot.slane %v689_v27, 1 }
 0x337   : > { %v710_v50 = vadd.f32 %v709_v41, %v708_v14 }
 0x338   : > { %v701_v26 = vadd.f32 %v700_v22, %v699_v19  ;;  %v691_v45 = vadd.f32 %v690_v36, %v689_v27 }
 0x339   : > { %v711_v62 = vrot.slane %v710_v50, 1 }
 0x33a   : > { %v702_v28 = vrot.slane %v701_v26, 2  ;;  %v658_v29 = vpop.permute.xlu1 %657  ;;  %v742_v57 = vsel %vm571_vm2, %v691_v45, %v684_v52 }
 0x33b   : > { %v675_v33 = vmul.f32 %v658_v29, %v1280_v13  ;;  %v723_v13 = vrot.slane %v722_v42, 2  ;;  %v743_v63 = vsel %vm573_vm3, %v698_v61, %v742_v57  ;;  %v712_v55 = vadd.f32 %v711_v62, %v710_v50 }
 0x33c   : > { %v703_v38 = vadd.f32 %v702_v28, %v701_v26 }
 0x33d   : > { %v713_v11 = vsel %vm319_vm0, %v675_v33, 0.0  ;;  %v724_v53 = vadd.f32 %v723_v13, %v722_v42 }
 0x33e   : > { %v714_v39 = vrot.slane %v713_v11, 4  ;;  %v704_v46 = vrot.slane %v703_v38, 1 }
 0x33f   : > { %v725_v35 = vrot.slane %v724_v53, 1 }
 0x340   : > { %v715_v44 = vadd.f32 %v714_v39, %v713_v11  ;;  %v705_v60 = vadd.f32 %v704_v46, %v703_v38 }
 0x341   : > { %v726_v58 = vadd.f32 %v725_v35, %v724_v53 }
 0x342   : > { %v716_v47 = vrot.slane %v715_v44, 2  ;;  %v668_v48 = vpop.permute.xlu1 %667  ;;  %v744_v1 = vsel %vm575_vm4, %v705_v60, %v743_v63 }
 0x343   : > { %v677_v51 = vmul.f32 %v668_v48, %v1288_v15  ;;  %v745_v4 = vsel %vm577_vm5, %v712_v55, %v744_v1 }
 0x344   : > { %v717_v54 = vadd.f32 %v716_v47, %v715_v44 }
 0x345   : > { %v727_v56 = vsel %vm319_vm0, %v677_v51, 0.0 }
 0x346   : > { %v718_v37 = vrot.slane %v717_v54, 1  ;;  %v728_v21 = vrot.slane %v727_v56, 4 }
 0x348   : > { %v729_v31 = vadd.f32 %v728_v21, %v727_v56  ;;  %v719_v15 = vadd.f32 %v718_v37, %v717_v54 }
 0x34a   : > { %v730_v2 = vrot.slane %v729_v31, 2  ;;  %v746_v5 = vsel %vm579_vm6, %v719_v15, %v745_v4 }
 0x34b   : > { %v747_v10 = vsel %vm581_vm7, %v726_v58, %v746_v5 }
 0x34c   : > { %v731_v3 = vadd.f32 %v730_v2, %v729_v31 }
 0x34e   : > { %v732_v59 = vrot.slane %v731_v3, 1 }
 0x350   : > { %v733_v6 = vadd.f32 %v732_v59, %v731_v3 }
 0x352   : > { %v748_v16 = vsel %vm583_vm8, %v733_v6, %v747_v10 }
 0x353   : > { %750 = vst.msk [vmem:[%s292_s5] sm:$0xff] %vm319_vm0, %v748_v16 }
 0x354   : > { %1039 = shalt.err (!%p1036_p0)
}
 0x355   : > { %889 = dma.vmem_to_hbm [thread:$0]  (%p1166_p9), %s765_s21, 128, %s767_s13, %s752_s16  }
 0x356 PF: > { %s778_s12 = sand.u32 1, %s1066_s23   ;;  %p1429_p1 = scmp.ge.s32.totalorder %s1078_s26, 2 }
 0x357   : > { %s779_s11 = scalar_lea.sflag [#allocation5], %s778_s12 }
 0x358   : > { %p892_p2 = pnand %p1429_p1, %p1170_p10 }
 0x35a   : > { %p893_p3 = pneg %p892_p2 }
 0x35c   : > { %1061 = dma.done.wait (%p893_p3), %s779_s11, 128  }
 0x35d   : > { %1063 = vsyncadd (%p893_p3), %s779_s11, 4294967168  ;;  %p20_p4 = scmp.ge.s32.totalorder %s1147_s28, 4   ;;  %s1430_s23 = smov %s1070_s24 }
 0x35e   : > { %s1431_s24 = smov %s1074_s25  ;;  %s1432_s25 = smov %s1159_s7 }
 0x35f   : > { %s1433_s26 = smov %s1147_s28  ;;  %22 = sbr.rel (!%p20_p4) target bundleno = 7 (0x7), region = 92 }
 0x364   :  { %785 = vsyncpa [#allocation4], 1 }
 0x365   :  { %787 = vsyncpa [#allocation4 + $0x1], 1 }
 0x366   :  { %788 = vsyncpa [#allocation5], 1 }
 0x367   :  { %790 = vsyncpa [#allocation5 + $0x1], 1 }

</bundles_post_ra>
